<compile_context>
chip_gen: v7x
topology: tpu7x:2x2x1
jax: 0.10.0
libtpu: 0.0.40
codegen_flags: <defaults>
</compile_context>

<pallas_src>
import math

import jax
import jax.numpy as jnp
from jax.experimental import pallas as pl
from jax.experimental.pallas import tpu as pltpu

# Module hyperparameters (from the PyTorch script)
HIDDEN_SIZE = 30
INPUT_SIZE = 2
NUM_CLASSES = 2
NUM_LAYERS = 1  # single layer implemented (spec uses num_layers=1)

# Small example shapes
SEQ_LEN = 8
BATCH = 2

# Fused operand width: [h (30 lanes) | x (2 lanes)] = 32 lanes; each gate is
# padded to 32 output lanes so the 4 gates tile exactly one 128-lane vreg.
ZW = HIDDEN_SIZE + INPUT_SIZE
GATE_W = 4 * ZW          # 128 = one full lane vreg of gate pre-activations
OUT_W = 128              # lane-dense FC output width (sliced to NUM_CLASSES outside)
assert ZW == 32, "kernel layout assumes hidden_size + input_size == 32"

_HP = jax.lax.Precision.HIGHEST


def lstm_kernel(x_ref, w_ref, b_ref, fcw_ref, fcb_ref, out_ref):
    """Refs:
       x_ref:   (T*Bp, ZW)   flattened time-major input; x_t in lanes [H, H+I), rest zero
       w_ref:   (ZW, 4*ZW)   fused input+recurrent weights (per-gate 32-lane blocks)
       b_ref:   (1, 4*ZW)    fused biases (b_ih + b_hh), pad lanes zero
       fcw_ref: (ZW, OUT_W)  FC weight (rows >= H zero, cols >= C zero)
       fcb_ref: (1, OUT_W)   FC bias (lanes >= C zero)
       out_ref: (T*Bp, OUT_W) flattened time-major lane-dense output
    """
    TB, Z = x_ref.shape
    T = SEQ_LEN
    Bp = TB // T

    # Weights stay resident (VMEM / vregs) for the whole kernel.
    w = w_ref[...]  # (Z, 4Z)

    # All x-dependent work hoisted off the serial chain: ONE (T*Bp,32)@(32,128)
    # MXU matmul + one bias broadcast for the whole sequence.
    pre_x = jnp.dot(x_ref[...], w, preferred_element_type=jnp.float32,
                    precision=_HP) + b_ref[...]                    # (T*Bp, 4Z)

    # Carry lanes [H, Z) of h/c stay exactly zero: their weight columns and
    # bias lanes are zero (asserted in pack_params), so there i = f = o = 0.5,
    # g = 0 and the update 0.5*0 + 0.5*0 == 0 keeps them zero forever.
    h = jnp.zeros((Bp, Z), jnp.float32)
    c = jnp.zeros((Bp, Z), jnp.float32)

    hs = []
    # Static, fully-unrolled time loop (the recurrence is inherently serial).
    # Only h @ W sits on the critical path per step.
    for t in range(T):
        pre = jnp.dot(h, w, preferred_element_type=jnp.float32,
                      precision=_HP) + pre_x[t * Bp:(t + 1) * Bp, :]   # (Bp, 4Z)
        # Two full-vreg EUP passes instead of four lane-sliced ones.
        sig = jax.nn.sigmoid(pre)
        th = jnp.tanh(pre)
        i_g = sig[:, 0 * Z:1 * Z]
        f_g = sig[:, 1 * Z:2 * Z]
        g_g = th[:, 2 * Z:3 * Z]
        o_g = sig[:, 3 * Z:4 * Z]
        c = f_g * c + i_g * g_g
        h = o_g * jnp.tanh(c)
        hs.append(h)  # stays in vregs; no VMEM scratch round-trip

    # Single batched FC projection + one dense (unmasked) output store.
    h_all = jnp.concatenate(hs, axis=0)                              # (T*Bp, Z)
    y = jnp.dot(h_all, fcw_ref[...], preferred_element_type=jnp.float32,
                precision=_HP) + fcb_ref[...]                        # (T*Bp, OUT_W)
    out_ref[...] = y.astype(out_ref.dtype)


def lstm_model_forward(x, w_fused, b_fused, fcw_p, fcb_p):
    """x: (T, B, I) f32.  Returns (T, B, NUM_CLASSES) f32."""
    T, B, I = x.shape
    H = HIDDEN_SIZE
    Bp = ((B + 7) // 8) * 8  # pad batch to a full sublane group (8)

    # Embed x into the fused operand layout: lanes [H, H+I) carry x_t, lanes
    # [0, H) are zero (the h contribution is added via a separate matmul inside
    # the kernel). Padded batch rows are all-zero and sliced off below.
    xp = (jnp.zeros((T, Bp, ZW), jnp.float32)
          .at[:, :B, H:H + I].set(x)
          .reshape(T * Bp, ZW))

    out_flat = pl.pallas_call(
        lstm_kernel,
        out_shape=jax.ShapeDtypeStruct((T * Bp, OUT_W), jnp.float32),
        in_specs=[pl.BlockSpec(memory_space=pltpu.MemorySpace.VMEM)] * 5,
        out_specs=pl.BlockSpec(memory_space=pltpu.MemorySpace.VMEM),
    )(xp, w_fused, b_fused, fcw_p, fcb_p)

    return out_flat.reshape(T, Bp, OUT_W)[:, :B, :NUM_CLASSES]


def init_params(key):
    """PyTorch-style init: LSTM params U(-1/sqrt(H), 1/sqrt(H)); Linear
    U(-1/sqrt(fan_in), 1/sqrt(fan_in)). Returned in raw PyTorch layout."""
    H, I, C = HIDDEN_SIZE, INPUT_SIZE, NUM_CLASSES
    k = 1.0 / math.sqrt(H)
    ks = jax.random.split(key, 6)

    w_ih = jax.random.uniform(ks[0], (4 * H, I), jnp.float32, -k, k)   # [i,f,g,o]
    w_hh = jax.random.uniform(ks[1], (4 * H, H), jnp.float32, -k, k)
    b_ih = jax.random.uniform(ks[2], (4 * H,), jnp.float32, -k, k)
    b_hh = jax.random.uniform(ks[3], (4 * H,), jnp.float32, -k, k)

    fc_w = jax.random.uniform(ks[4], (C, H), jnp.float32, -k, k)
    fc_b = jax.random.uniform(ks[5], (C,), jnp.float32, -k, k)
    return w_ih, w_hh, b_ih, b_hh, fc_w, fc_b


def pack_params(w_ih, w_hh, b_ih, b_hh, fc_w, fc_b):
    """Repack PyTorch-layout params into the fused, lane-padded kernel layout."""
    H, I, C = HIDDEN_SIZE, INPUT_SIZE, NUM_CLASSES
    Z = ZW

    w_fused = jnp.zeros((Z, 4 * Z), jnp.float32)
    b_fused = jnp.zeros((1, 4 * Z), jnp.float32)
    for g in range(4):
        w_hh_g = w_hh[g * H:(g + 1) * H, :]            # (H, H)
        w_ih_g = w_ih[g * H:(g + 1) * H, :]            # (H, I)
        b_g = b_ih[g * H:(g + 1) * H] + b_hh[g * H:(g + 1) * H]
        # rows [0, H): h weights; rows [H, H+I): x weights; pad cols stay 0.
        w_fused = w_fused.at[0:H, g * Z:g * Z + H].set(w_hh_g.T)
        w_fused = w_fused.at[H:H + I, g * Z:g * Z + H].set(w_ih_g.T)
        b_fused = b_fused.at[0, g * Z:g * Z + H].set(b_g)

    # Lane-dense FC operands (pad rows >= H and cols/lanes >= C with zeros).
    fcw_p = jnp.zeros((Z, OUT_W), jnp.float32).at[0:H, 0:C].set(fc_w.T)
    fcb_p = jnp.zeros((1, OUT_W), jnp.float32).at[0, 0:C].set(fc_b)

    # Zero-invariant guards: these pads keep carry lanes [H, Z) of h/c exactly
    # zero inside the kernel; a future layout change must not silently break it.
    for g in range(4):
        assert bool(jnp.all(w_fused[:, g * Z + H:(g + 1) * Z] == 0.0))
        assert bool(jnp.all(b_fused[:, g * Z + H:(g + 1) * Z] == 0.0))
    assert bool(jnp.all(fcw_p[H:, :] == 0.0))
    assert bool(jnp.all(fcw_p[:, C:] == 0.0))
    assert bool(jnp.all(fcb_p[:, C:] == 0.0))

    return w_fused, b_fused, fcw_p, fcb_p


def reference_forward(x, w_ih, w_hh, b_ih, b_hh, fc_w, fc_b):
    """Pure-JAX reference (lax.scan) mirroring PyTorch LSTM + Linear.
    Uses the same HIGHEST matmul precision as the kernel."""
    T, B, I = x.shape
    H = HIDDEN_SIZE

    def step(carry, x_t):
        h, c = carry
        gates = (jnp.dot(x_t, w_ih.T, precision=_HP)
                 + jnp.dot(h, w_hh.T, precision=_HP)
                 + b_ih + b_hh)                          # (B, 4H), order [i,f,g,o]
        i_g = jax.nn.sigmoid(gates[:, 0 * H:1 * H])
        f_g = jax.nn.sigmoid(gates[:, 1 * H:2 * H])
        g_g = jnp.tanh(gates[:, 2 * H:3 * H])
        o_g = jax.nn.sigmoid(gates[:, 3 * H:4 * H])
        c_new = f_g * c + i_g * g_g
        h_new = o_g * jnp.tanh(c_new)
        y = jnp.dot(h_new, fc_w.T, precision=_HP) + fc_b
        return (h_new, c_new), y

    h0 = jnp.zeros((B, H), jnp.float32)
    c0 = jnp.zeros((B, H), jnp.float32)
    _, ys = jax.lax.scan(step, (h0, c0), x)
    return ys  # (T, B, C)


if __name__ == "__main__":
    key = jax.random.PRNGKey(0)
    k_x, k_p = jax.random.split(key)

    x = jax.random.normal(k_x, (SEQ_LEN, BATCH, INPUT_SIZE), jnp.float32)
    w_ih, w_hh, b_ih, b_hh, fc_w, fc_b = init_params(k_p)
    w_fused, b_fused, fcw_p, fcb_p = pack_params(w_ih, w_hh, b_ih, b_hh, fc_w, fc_b)

    out = lstm_model_forward(x, w_fused, b_fused, fcw_p, fcb_p)
    out = jax.block_until_ready(out)

    ref = reference_forward(x, w_ih, w_hh, b_ih, b_hh, fc_w, fc_b)
    assert out.shape == (SEQ_LEN, BATCH, NUM_CLASSES)
    assert jnp.allclose(out, ref, atol=2e-5, rtol=2e-5), "mismatch vs reference"

    print("KERNEL_OK")
</pallas_src>

<mosaic_0001>
module attributes {stable_mosaic.version = 11 : i64} {
  func.func @lstm_kernel(%arg0: memref<64x32xf32, #tpu.memory_space<vmem>>, %arg1: memref<32x128xf32, #tpu.memory_space<vmem>>, %arg2: memref<1x128xf32, #tpu.memory_space<vmem>>, %arg3: memref<32x128xf32, #tpu.memory_space<vmem>>, %arg4: memref<1x128xf32, #tpu.memory_space<vmem>>, %arg5: memref<64x128xf32, #tpu.memory_space<vmem>>) attributes {dimension_semantics = [], scalar_prefetch = 0 : i64, scratch_operands = 0 : i64, tpu.core_type = #tpu.core_type<tc>} {
    %c0 = arith.constant 0 : index
    %c0_0 = arith.constant 0 : index
    %0 = vector.load %arg1[%c0, %c0_0] : memref<32x128xf32, #tpu.memory_space<vmem>>, vector<32x128xf32>
    %c0_1 = arith.constant 0 : index
    %c0_2 = arith.constant 0 : index
    %1 = vector.load %arg0[%c0_1, %c0_2] : memref<64x32xf32, #tpu.memory_space<vmem>>, vector<64x32xf32>
    %cst = arith.constant dense<0.000000e+00> : vector<64x128xf32>
    %2 = tpu.matmul %1, %0, %cst {dimension_numbers = #tpu.dot_dimension_numbers<[1], [0], [0], [1], [0, 0, 1, 1], [], []>, precision = #tpu.contract_precision<fp32>} : vector<64x32xf32>, vector<32x128xf32>, vector<64x128xf32> -> vector<64x128xf32>
    %c0_3 = arith.constant 0 : index
    %c0_4 = arith.constant 0 : index
    %3 = vector.load %arg2[%c0_3, %c0_4] : memref<1x128xf32, #tpu.memory_space<vmem>>, vector<1x128xf32>
    %4 = vector.broadcast %3 : vector<1x128xf32> to vector<64x128xf32>
    %5 = arith.addf %2, %4 : vector<64x128xf32>
    %cst_5 = arith.constant 0.000000e+00 : f32
    %6 = vector.broadcast %cst_5 : f32 to vector<8x32xf32>
    %cst_6 = arith.constant 0.000000e+00 : f32
    %7 = vector.broadcast %cst_6 : f32 to vector<8x32xf32>
    %cst_7 = arith.constant dense<0.000000e+00> : vector<8x128xf32>
    %8 = tpu.matmul %6, %0, %cst_7 {dimension_numbers = #tpu.dot_dimension_numbers<[1], [0], [0], [1], [0, 0, 1, 1], [], []>, precision = #tpu.contract_precision<fp32>} : vector<8x32xf32>, vector<32x128xf32>, vector<8x128xf32> -> vector<8x128xf32>
    %9 = vector.extract_strided_slice %5 {offsets = [0, 0], sizes = [8, 128], strides = [1, 1]} : vector<64x128xf32> to vector<8x128xf32>
    %10 = arith.addf %8, %9 : vector<8x128xf32>
    %11 = arith.negf %10 : vector<8x128xf32>
    %12 = math.exp %11 : vector<8x128xf32>
    %cst_8 = arith.constant 1.000000e+00 : f32
    %13 = vector.broadcast %cst_8 : f32 to vector<8x128xf32>
    %14 = arith.addf %13, %12 : vector<8x128xf32>
    %15 = arith.divf %13, %14 : vector<8x128xf32>
    %16 = math.tanh %10 : vector<8x128xf32>
    %17 = vector.extract_strided_slice %15 {offsets = [0, 0], sizes = [8, 32], strides = [1, 1]} : vector<8x128xf32> to vector<8x32xf32>
    %18 = vector.extract_strided_slice %15 {offsets = [0, 32], sizes = [8, 32], strides = [1, 1]} : vector<8x128xf32> to vector<8x32xf32>
    %19 = vector.extract_strided_slice %16 {offsets = [0, 64], sizes = [8, 32], strides = [1, 1]} : vector<8x128xf32> to vector<8x32xf32>
    %20 = vector.extract_strided_slice %15 {offsets = [0, 96], sizes = [8, 32], strides = [1, 1]} : vector<8x128xf32> to vector<8x32xf32>
    %21 = arith.mulf %18, %7 : vector<8x32xf32>
    %22 = arith.mulf %17, %19 : vector<8x32xf32>
    %23 = arith.addf %21, %22 : vector<8x32xf32>
    %24 = math.tanh %23 : vector<8x32xf32>
    %25 = arith.mulf %20, %24 : vector<8x32xf32>
    %cst_9 = arith.constant dense<0.000000e+00> : vector<8x128xf32>
    %26 = tpu.matmul %25, %0, %cst_9 {dimension_numbers = #tpu.dot_dimension_numbers<[1], [0], [0], [1], [0, 0, 1, 1], [], []>, precision = #tpu.contract_precision<fp32>} : vector<8x32xf32>, vector<32x128xf32>, vector<8x128xf32> -> vector<8x128xf32>
    %27 = vector.extract_strided_slice %5 {offsets = [8, 0], sizes = [8, 128], strides = [1, 1]} : vector<64x128xf32> to vector<8x128xf32>
    %28 = arith.addf %26, %27 : vector<8x128xf32>
    %29 = arith.negf %28 : vector<8x128xf32>
    %30 = math.exp %29 : vector<8x128xf32>
    %cst_10 = arith.constant 1.000000e+00 : f32
    %31 = vector.broadcast %cst_10 : f32 to vector<8x128xf32>
    %32 = arith.addf %31, %30 : vector<8x128xf32>
    %33 = arith.divf %31, %32 : vector<8x128xf32>
    %34 = math.tanh %28 : vector<8x128xf32>
    %35 = vector.extract_strided_slice %33 {offsets = [0, 0], sizes = [8, 32], strides = [1, 1]} : vector<8x128xf32> to vector<8x32xf32>
    %36 = vector.extract_strided_slice %33 {offsets = [0, 32], sizes = [8, 32], strides = [1, 1]} : vector<8x128xf32> to vector<8x32xf32>
    %37 = vector.extract_strided_slice %34 {offsets = [0, 64], sizes = [8, 32], strides = [1, 1]} : vector<8x128xf32> to vector<8x32xf32>
    %38 = vector.extract_strided_slice %33 {offsets = [0, 96], sizes = [8, 32], strides = [1, 1]} : vector<8x128xf32> to vector<8x32xf32>
    %39 = arith.mulf %36, %23 : vector<8x32xf32>
    %40 = arith.mulf %35, %37 : vector<8x32xf32>
    %41 = arith.addf %39, %40 : vector<8x32xf32>
    %42 = math.tanh %41 : vector<8x32xf32>
    %43 = arith.mulf %38, %42 : vector<8x32xf32>
    %cst_11 = arith.constant dense<0.000000e+00> : vector<8x128xf32>
    %44 = tpu.matmul %43, %0, %cst_11 {dimension_numbers = #tpu.dot_dimension_numbers<[1], [0], [0], [1], [0, 0, 1, 1], [], []>, precision = #tpu.contract_precision<fp32>} : vector<8x32xf32>, vector<32x128xf32>, vector<8x128xf32> -> vector<8x128xf32>
    %45 = vector.extract_strided_slice %5 {offsets = [16, 0], sizes = [8, 128], strides = [1, 1]} : vector<64x128xf32> to vector<8x128xf32>
    %46 = arith.addf %44, %45 : vector<8x128xf32>
    %47 = arith.negf %46 : vector<8x128xf32>
    %48 = math.exp %47 : vector<8x128xf32>
    %cst_12 = arith.constant 1.000000e+00 : f32
    %49 = vector.broadcast %cst_12 : f32 to vector<8x128xf32>
    %50 = arith.addf %49, %48 : vector<8x128xf32>
    %51 = arith.divf %49, %50 : vector<8x128xf32>
    %52 = math.tanh %46 : vector<8x128xf32>
    %53 = vector.extract_strided_slice %51 {offsets = [0, 0], sizes = [8, 32], strides = [1, 1]} : vector<8x128xf32> to vector<8x32xf32>
    %54 = vector.extract_strided_slice %51 {offsets = [0, 32], sizes = [8, 32], strides = [1, 1]} : vector<8x128xf32> to vector<8x32xf32>
    %55 = vector.extract_strided_slice %52 {offsets = [0, 64], sizes = [8, 32], strides = [1, 1]} : vector<8x128xf32> to vector<8x32xf32>
    %56 = vector.extract_strided_slice %51 {offsets = [0, 96], sizes = [8, 32], strides = [1, 1]} : vector<8x128xf32> to vector<8x32xf32>
    %57 = arith.mulf %54, %41 : vector<8x32xf32>
    %58 = arith.mulf %53, %55 : vector<8x32xf32>
    %59 = arith.addf %57, %58 : vector<8x32xf32>
    %60 = math.tanh %59 : vector<8x32xf32>
    %61 = arith.mulf %56, %60 : vector<8x32xf32>
    %cst_13 = arith.constant dense<0.000000e+00> : vector<8x128xf32>
    %62 = tpu.matmul %61, %0, %cst_13 {dimension_numbers = #tpu.dot_dimension_numbers<[1], [0], [0], [1], [0, 0, 1, 1], [], []>, precision = #tpu.contract_precision<fp32>} : vector<8x32xf32>, vector<32x128xf32>, vector<8x128xf32> -> vector<8x128xf32>
    %63 = vector.extract_strided_slice %5 {offsets = [24, 0], sizes = [8, 128], strides = [1, 1]} : vector<64x128xf32> to vector<8x128xf32>
    %64 = arith.addf %62, %63 : vector<8x128xf32>
    %65 = arith.negf %64 : vector<8x128xf32>
    %66 = math.exp %65 : vector<8x128xf32>
    %cst_14 = arith.constant 1.000000e+00 : f32
    %67 = vector.broadcast %cst_14 : f32 to vector<8x128xf32>
    %68 = arith.addf %67, %66 : vector<8x128xf32>
    %69 = arith.divf %67, %68 : vector<8x128xf32>
    %70 = math.tanh %64 : vector<8x128xf32>
    %71 = vector.extract_strided_slice %69 {offsets = [0, 0], sizes = [8, 32], strides = [1, 1]} : vector<8x128xf32> to vector<8x32xf32>
    %72 = vector.extract_strided_slice %69 {offsets = [0, 32], sizes = [8, 32], strides = [1, 1]} : vector<8x128xf32> to vector<8x32xf32>
    %73 = vector.extract_strided_slice %70 {offsets = [0, 64], sizes = [8, 32], strides = [1, 1]} : vector<8x128xf32> to vector<8x32xf32>
    %74 = vector.extract_strided_slice %69 {offsets = [0, 96], sizes = [8, 32], strides = [1, 1]} : vector<8x128xf32> to vector<8x32xf32>
    %75 = arith.mulf %72, %59 : vector<8x32xf32>
    %76 = arith.mulf %71, %73 : vector<8x32xf32>
    %77 = arith.addf %75, %76 : vector<8x32xf32>
    %78 = math.tanh %77 : vector<8x32xf32>
    %79 = arith.mulf %74, %78 : vector<8x32xf32>
    %cst_15 = arith.constant dense<0.000000e+00> : vector<8x128xf32>
    %80 = tpu.matmul %79, %0, %cst_15 {dimension_numbers = #tpu.dot_dimension_numbers<[1], [0], [0], [1], [0, 0, 1, 1], [], []>, precision = #tpu.contract_precision<fp32>} : vector<8x32xf32>, vector<32x128xf32>, vector<8x128xf32> -> vector<8x128xf32>
    %81 = vector.extract_strided_slice %5 {offsets = [32, 0], sizes = [8, 128], strides = [1, 1]} : vector<64x128xf32> to vector<8x128xf32>
    %82 = arith.addf %80, %81 : vector<8x128xf32>
    %83 = arith.negf %82 : vector<8x128xf32>
    %84 = math.exp %83 : vector<8x128xf32>
    %cst_16 = arith.constant 1.000000e+00 : f32
    %85 = vector.broadcast %cst_16 : f32 to vector<8x128xf32>
    %86 = arith.addf %85, %84 : vector<8x128xf32>
    %87 = arith.divf %85, %86 : vector<8x128xf32>
    %88 = math.tanh %82 : vector<8x128xf32>
    %89 = vector.extract_strided_slice %87 {offsets = [0, 0], sizes = [8, 32], strides = [1, 1]} : vector<8x128xf32> to vector<8x32xf32>
    %90 = vector.extract_strided_slice %87 {offsets = [0, 32], sizes = [8, 32], strides = [1, 1]} : vector<8x128xf32> to vector<8x32xf32>
    %91 = vector.extract_strided_slice %88 {offsets = [0, 64], sizes = [8, 32], strides = [1, 1]} : vector<8x128xf32> to vector<8x32xf32>
    %92 = vector.extract_strided_slice %87 {offsets = [0, 96], sizes = [8, 32], strides = [1, 1]} : vector<8x128xf32> to vector<8x32xf32>
    %93 = arith.mulf %90, %77 : vector<8x32xf32>
    %94 = arith.mulf %89, %91 : vector<8x32xf32>
    %95 = arith.addf %93, %94 : vector<8x32xf32>
    %96 = math.tanh %95 : vector<8x32xf32>
    %97 = arith.mulf %92, %96 : vector<8x32xf32>
    %cst_17 = arith.constant dense<0.000000e+00> : vector<8x128xf32>
    %98 = tpu.matmul %97, %0, %cst_17 {dimension_numbers = #tpu.dot_dimension_numbers<[1], [0], [0], [1], [0, 0, 1, 1], [], []>, precision = #tpu.contract_precision<fp32>} : vector<8x32xf32>, vector<32x128xf32>, vector<8x128xf32> -> vector<8x128xf32>
    %99 = vector.extract_strided_slice %5 {offsets = [40, 0], sizes = [8, 128], strides = [1, 1]} : vector<64x128xf32> to vector<8x128xf32>
    %100 = arith.addf %98, %99 : vector<8x128xf32>
    %101 = arith.negf %100 : vector<8x128xf32>
    %102 = math.exp %101 : vector<8x128xf32>
    %cst_18 = arith.constant 1.000000e+00 : f32
    %103 = vector.broadcast %cst_18 : f32 to vector<8x128xf32>
    %104 = arith.addf %103, %102 : vector<8x128xf32>
    %105 = arith.divf %103, %104 : vector<8x128xf32>
    %106 = math.tanh %100 : vector<8x128xf32>
    %107 = vector.extract_strided_slice %105 {offsets = [0, 0], sizes = [8, 32], strides = [1, 1]} : vector<8x128xf32> to vector<8x32xf32>
    %108 = vector.extract_strided_slice %105 {offsets = [0, 32], sizes = [8, 32], strides = [1, 1]} : vector<8x128xf32> to vector<8x32xf32>
    %109 = vector.extract_strided_slice %106 {offsets = [0, 64], sizes = [8, 32], strides = [1, 1]} : vector<8x128xf32> to vector<8x32xf32>
    %110 = vector.extract_strided_slice %105 {offsets = [0, 96], sizes = [8, 32], strides = [1, 1]} : vector<8x128xf32> to vector<8x32xf32>
    %111 = arith.mulf %108, %95 : vector<8x32xf32>
    %112 = arith.mulf %107, %109 : vector<8x32xf32>
    %113 = arith.addf %111, %112 : vector<8x32xf32>
    %114 = math.tanh %113 : vector<8x32xf32>
    %115 = arith.mulf %110, %114 : vector<8x32xf32>
    %cst_19 = arith.constant dense<0.000000e+00> : vector<8x128xf32>
    %116 = tpu.matmul %115, %0, %cst_19 {dimension_numbers = #tpu.dot_dimension_numbers<[1], [0], [0], [1], [0, 0, 1, 1], [], []>, precision = #tpu.contract_precision<fp32>} : vector<8x32xf32>, vector<32x128xf32>, vector<8x128xf32> -> vector<8x128xf32>
    %117 = vector.extract_strided_slice %5 {offsets = [48, 0], sizes = [8, 128], strides = [1, 1]} : vector<64x128xf32> to vector<8x128xf32>
    %118 = arith.addf %116, %117 : vector<8x128xf32>
    %119 = arith.negf %118 : vector<8x128xf32>
    %120 = math.exp %119 : vector<8x128xf32>
    %cst_20 = arith.constant 1.000000e+00 : f32
    %121 = vector.broadcast %cst_20 : f32 to vector<8x128xf32>
    %122 = arith.addf %121, %120 : vector<8x128xf32>
    %123 = arith.divf %121, %122 : vector<8x128xf32>
    %124 = math.tanh %118 : vector<8x128xf32>
    %125 = vector.extract_strided_slice %123 {offsets = [0, 0], sizes = [8, 32], strides = [1, 1]} : vector<8x128xf32> to vector<8x32xf32>
    %126 = vector.extract_strided_slice %123 {offsets = [0, 32], sizes = [8, 32], strides = [1, 1]} : vector<8x128xf32> to vector<8x32xf32>
    %127 = vector.extract_strided_slice %124 {offsets = [0, 64], sizes = [8, 32], strides = [1, 1]} : vector<8x128xf32> to vector<8x32xf32>
    %128 = vector.extract_strided_slice %123 {offsets = [0, 96], sizes = [8, 32], strides = [1, 1]} : vector<8x128xf32> to vector<8x32xf32>
    %129 = arith.mulf %126, %113 : vector<8x32xf32>
    %130 = arith.mulf %125, %127 : vector<8x32xf32>
    %131 = arith.addf %129, %130 : vector<8x32xf32>
    %132 = math.tanh %131 : vector<8x32xf32>
    %133 = arith.mulf %128, %132 : vector<8x32xf32>
    %cst_21 = arith.constant dense<0.000000e+00> : vector<8x128xf32>
    %134 = tpu.matmul %133, %0, %cst_21 {dimension_numbers = #tpu.dot_dimension_numbers<[1], [0], [0], [1], [0, 0, 1, 1], [], []>, precision = #tpu.contract_precision<fp32>} : vector<8x32xf32>, vector<32x128xf32>, vector<8x128xf32> -> vector<8x128xf32>
    %135 = vector.extract_strided_slice %5 {offsets = [56, 0], sizes = [8, 128], strides = [1, 1]} : vector<64x128xf32> to vector<8x128xf32>
    %136 = arith.addf %134, %135 : vector<8x128xf32>
    %137 = arith.negf %136 : vector<8x128xf32>
    %138 = math.exp %137 : vector<8x128xf32>
    %cst_22 = arith.constant 1.000000e+00 : f32
    %139 = vector.broadcast %cst_22 : f32 to vector<8x128xf32>
    %140 = arith.addf %139, %138 : vector<8x128xf32>
    %141 = arith.divf %139, %140 : vector<8x128xf32>
    %142 = math.tanh %136 : vector<8x128xf32>
    %143 = vector.extract_strided_slice %141 {offsets = [0, 0], sizes = [8, 32], strides = [1, 1]} : vector<8x128xf32> to vector<8x32xf32>
    %144 = vector.extract_strided_slice %141 {offsets = [0, 32], sizes = [8, 32], strides = [1, 1]} : vector<8x128xf32> to vector<8x32xf32>
    %145 = vector.extract_strided_slice %142 {offsets = [0, 64], sizes = [8, 32], strides = [1, 1]} : vector<8x128xf32> to vector<8x32xf32>
    %146 = vector.extract_strided_slice %141 {offsets = [0, 96], sizes = [8, 32], strides = [1, 1]} : vector<8x128xf32> to vector<8x32xf32>
    %147 = arith.mulf %144, %131 : vector<8x32xf32>
    %148 = arith.mulf %143, %145 : vector<8x32xf32>
    %149 = arith.addf %147, %148 : vector<8x32xf32>
    %150 = math.tanh %149 : vector<8x32xf32>
    %151 = arith.mulf %146, %150 : vector<8x32xf32>
    %152 = tpu.concatenate %25, %43, %61, %79, %97, %115, %133, %151 in 0 : vector<8x32xf32>, vector<8x32xf32>, vector<8x32xf32>, vector<8x32xf32>, vector<8x32xf32>, vector<8x32xf32>, vector<8x32xf32>, vector<8x32xf32> -> vector<64x32xf32>
    %c0_23 = arith.constant 0 : index
    %c0_24 = arith.constant 0 : index
    %153 = vector.load %arg3[%c0_23, %c0_24] : memref<32x128xf32, #tpu.memory_space<vmem>>, vector<32x128xf32>
    %cst_25 = arith.constant dense<0.000000e+00> : vector<64x128xf32>
    %154 = tpu.matmul %152, %153, %cst_25 {dimension_numbers = #tpu.dot_dimension_numbers<[1], [0], [0], [1], [0, 0, 1, 1], [], []>, precision = #tpu.contract_precision<fp32>} : vector<64x32xf32>, vector<32x128xf32>, vector<64x128xf32> -> vector<64x128xf32>
    %c0_26 = arith.constant 0 : index
    %c0_27 = arith.constant 0 : index
    %155 = vector.load %arg4[%c0_26, %c0_27] : memref<1x128xf32, #tpu.memory_space<vmem>>, vector<1x128xf32>
    %156 = vector.broadcast %155 : vector<1x128xf32> to vector<64x128xf32>
    %157 = arith.addf %154, %156 : vector<64x128xf32>
    %c0_28 = arith.constant 0 : index
    %c0_29 = arith.constant 0 : index
    %158 = vector.load %arg5[%c0_28, %c0_29] : memref<64x128xf32, #tpu.memory_space<vmem>>, vector<64x128xf32>
    tpu.vector_store %arg5[%c0_28, %c0_29], %157 {strides = array<i32>} : memref<64x128xf32, #tpu.memory_space<vmem>>, vector<64x128xf32>,
    return
  }
}

</mosaic_0001>

<bundles_post_ra>
// kernel: tpu_custom_call.1
= control target key start
LH: loop header
LB: loop body
LE: loop exit
PB: predicated region body
PF: predicated region fallthrough
CT: control target
= control target key end

     0   :  { %vm40_vm0 = vcmask 261120   ;;  %s8411_s0 = inlined_call_operand.vmem [shape: f32[64,32], index: 0, kind: input, shape index: {}]   ;;  %s8412_s1 = inlined_call_operand.vmem [shape: f32[32,128], index: 1, kind: input, shape index: {}]   ;;  %s8413_s2 = inlined_call_operand.vmem [shape: f32[1,128], index: 2, kind: input, shape index: {}]   ;;  %s8414_s3 = inlined_call_operand.vmem [shape: f32[32,128], index: 3, kind: input, shape index: {}]   ;;  %s8415_s4 = inlined_call_operand.vmem [shape: f32[1,128], index: 4, kind: input, shape index: {}]   ;;  %s8416_s5 = inlined_call_operand.hbm [shape: f32[64,128], index: 5, kind: output, shape index: {}]  }
   0x1   :  { %v21_v0 = vld [vmem:[%s8412_s1] sm:$0xff]  ;;  %v22_v1 = vld [vmem:[%s8412_s1 + $0x8] sm:$0xff]  ;;  %v23_v2 = vld [vmem:[%s8412_s1 + $0x10] sm:$0xff] }
   0x2   :  { %v66_v3 = vand.u32 4294901760, %v21_v0  ;;  %v69_v4 = vand.u32 4294901760, %v22_v1  ;;  %v7611_v5 = vld [vmem:[%s8412_s1 + $0x18] sm:$0xff]  ;;  %v72_v6 = vand.u32 4294901760, %v23_v2  ;;  %v25_v7 = vld [vmem:[%s8411_s0] sm:$0xff]  ;;  %v26_v8 = vld [vmem:[%s8411_s0 + $0x8] sm:$0xff] }
   0x3   :  { %v75_v9 = vand.u32 4294901760, %v7611_v5  ;;  %v42_v10 = vsel %vm40_vm0, %v25_v7, 0  ;;  %v45_v11 = vsel %vm40_vm0, %v26_v8, 0  ;;  %v27_v12 = vld [vmem:[%s8411_s0 + $0x10] sm:$0xff]  ;;  %v28_v13 = vld [vmem:[%s8411_s0 + $0x18] sm:$0xff]  ;;  %v29_v18 = vld [vmem:[%s8411_s0 + $0x20] sm:$0xff] }
   0x4   :  { %v7628_v14 = vpack.c.bf16 %v69_v4, %v66_v3  ;;  %v7630_v15 = vand.u32 4294901760, %v42_v10  ;;  %v7632_v16 = vand.u32 4294901760, %v45_v11  ;;  %v7634_v17 = vsub.f32 %v21_v0, %v66_v3  ;;  %v30_v19 = vld [vmem:[%s8411_s0 + $0x28] sm:$0xff] }
   0x5   :  { %v7644_v20 = vpack.c.bf16 %v75_v9, %v72_v6  ;;  %v7646_v21 = vsub.f32 %v22_v1, %v69_v4  ;;  %v48_v22 = vsel %vm40_vm0, %v27_v12, 0  ;;  %v51_v23 = vsel %vm40_vm0, %v28_v13, 0 }
   0x6   :  { %10 = vsyncpa [#allocation3], 0  ;;  %6950 = vmatprep.subr.bf16.mxu1 %v7628_v14  ;;  %6974 = vmatprep.subr.bf16.mxu0 %v7628_v14  ;;  %v7653_v24 = vsub.f32 %v42_v10, %v7630_v15  ;;  %v7656_v25 = vsub.f32 %v45_v11, %v7632_v16  ;;  %v217_v26 = vand.u32 4294901760, %v7634_v17  ;;  %v7659_v27 = vand.u32 4294901760, %v48_v22  ;;  %v31_v52 = vld [vmem:[%s8411_s0 + $0x30] sm:$0xff]  ;;  %v32_v57 = vld [vmem:[%s8411_s0 + $0x38] sm:$0xff] }
   0x7   :  { %6952 = vmatpush3.bf16.msra.mxu1 %v7628_v14  ;;  %6976 = vmatpush3.bf16.msra.mxu0 %v7628_v14  ;;  %v224_v28 = vand.u32 4294901760, %v7646_v21  ;;  %v7664_v29 = vand.u32 4294901760, %v51_v23  ;;  %v54_v30 = vsel %vm40_vm0, %v29_v18, 0  ;;  %v57_v31 = vsel %vm40_vm0, %v30_v19, 0  ;;  %s7565_s17 = smov 32   ;;  %s7566_s27 = smov [#allocation2]  }
   0x8   :  { %6954 = vmatprep.subr.bf16.mxu1 %v7644_v20  ;;  %6978 = vmatprep.subr.bf16.mxu0 %v7644_v20  ;;  %v136_v32 = vand.u32 4294901760, %v7653_v24  ;;  %v146_v33 = vand.u32 4294901760, %v7656_v25  ;;  %v218_v34 = vsub.f32 %v7634_v17, %v217_v26  ;;  %v7674_v35 = vsub.f32 %v48_v22, %v7659_v27  ;;  %s5776_s28 = sshll.u32 %s7566_s27, 4  ;;  %s5777_s28 = int_to_ptr.vmem [resolvable:$true] %s5776_s28 }
   0x9   :  { %v225_v36 = vsub.f32 %v7646_v21, %v224_v28  ;;  %v7678_v37 = vsub.f32 %v51_v23, %v7664_v29  ;;  %v7680_v38 = vand.u32 4294901760, %v54_v30  ;;  %v7682_v39 = vand.u32 4294901760, %v57_v31  ;;  %p7542_p1 = scmp.lt.s32.totalorder %s5777_s28, %s5777_s28 }
   0xa   :  { %v137_v40 = vsub.f32 %v7653_v24, %v136_v32  ;;  %v147_v41 = vsub.f32 %v7656_v25, %v146_v33  ;;  %v219_v42 = vand.u32 4294901760, %v218_v34  ;;  %6249 = vmatprep.mubr.f32.mxu0 %v136_v32  ;;  %v156_v43 = vand.u32 4294901760, %v7674_v35 }
   0xb   :  { %6956 = vmatpush3.bf16.msra.mxu1 %v7644_v20  ;;  %6980 = vmatpush3.bf16.msra.mxu0 %v7644_v20  ;;  %v226_v44 = vand.u32 4294901760, %v225_v36  ;;  %v166_v45 = vand.u32 4294901760, %v7678_v37  ;;  %v7691_v46 = vsub.f32 %v54_v30, %v7680_v38  ;;  %v7694_v47 = vsub.f32 %v57_v31, %v7682_v39 }
   0xc   :  { %v138_v48 = vand.u32 4294901760, %v137_v40  ;;  %v148_v49 = vand.u32 4294901760, %v147_v41  ;;  %v157_v50 = vsub.f32 %v7674_v35, %v156_v43  ;;  %v7697_v51 = vsub.f32 %v23_v2, %v72_v6 }
   0xd   :  { %v7702_v53 = vpack.c.bf16 %v226_v44, %v219_v42  ;;  %v167_v54 = vsub.f32 %v7678_v37, %v166_v45  ;;  %v176_v55 = vand.u32 4294901760, %v7691_v46  ;;  %v186_v56 = vand.u32 4294901760, %v7694_v47 }
   0xe   :  { %6189 = vmatprep.mubr.f32.mxu1 %v138_v48  ;;  %6250 = vmatmul.mubr.f32.vlgmr.msra.gmra.mrb[0].mxu0 %v146_v33  ;;  %v158_v58 = vand.u32 4294901760, %v157_v50  ;;  %v231_v59 = vand.u32 4294901760, %v7697_v51  ;;  %v237_v60 = vsub.f32 %v7611_v5, %v75_v9  ;;  %v7714_v61 = vpack.c.bf16 %v224_v28, %v217_v26 }
   0xf   :  { %6190 = vmatmul.mubr.f32.vlgmr.msra.gmra.mrb[0].mxu1 %v148_v49  ;;  %6958 = vmatprep.subr.bf16.mxu1 %v7702_v53  ;;  %v168_v62 = vand.u32 4294901760, %v167_v54  ;;  %v177_v63 = vsub.f32 %v7691_v46, %v176_v55  ;;  %v187_v0 = vsub.f32 %v7694_v47, %v186_v56  ;;  %v60_v1 = vsel %vm40_vm0, %v31_v52, 0 }
  0x10   :  { %6960 = vmatpush3.bf16.msra.mxu1 %v7702_v53  ;;  %6192 = vmatprep.mubr.f32.mxu1 %v158_v58  ;;  %v232_v2 = vsub.f32 %v7697_v51, %v231_v59  ;;  %v238_v3 = vand.u32 4294901760, %v237_v60  ;;  %v7722_v4 = vand.u32 4294901760, %v60_v1  ;;  %v63_v5 = vsel %vm40_vm0, %v32_v57, 0 }
  0x11   :  { %6252 = vmatprep.mubr.f32.mxu0 %v156_v43  ;;  %v178_v6 = vand.u32 4294901760, %v177_v63  ;;  %6982 = vmatprep.subr.bf16.mxu0 %v7714_v61  ;;  %v7726_v7 = vand.u32 4294901760, %v63_v5  ;;  %v188_v12 = vand.u32 4294901760, %v187_v0  ;;  %v7746_v30 = vpack.c.bf16 %v7646_v21, %v7634_v17 }
  0x12   :  { %6253 = vmatmul.mubr.f32.gmra.mrb[2].mxu0 %v166_v45  ;;  %v233_v8 = vand.u32 4294901760, %v232_v2  ;;  %v239_v9 = vsub.f32 %v237_v60, %v238_v3  ;;  %v7729_v10 = vsub.f32 %v60_v1, %v7722_v4  ;;  %v7731_v11 = vpack.c.bf16 %v238_v3, %v231_v59 }
  0x13   :  { %6193 = vmatmul.mubr.f32.gmra.mrb[2].mxu1 %v168_v62  ;;  %6255 = vmatprep.mubr.f32.mxu0 %v176_v55  ;;  %v7734_v13 = vsub.f32 %v63_v5, %v7726_v7  ;;  %v7756_v17 = vpack.c.bf16 %v237_v60, %v7697_v51  ;;  %v7561_v21 = vmov 0.0|0.0   ;;  %vm7562_vm1 = vmmov 0  }
  0x14   :  { %6195 = vmatprep.mubr.f32.mxu1 %v178_v6  ;;  %v240_v18 = vand.u32 4294901760, %v239_v9  ;;  %v196_v19 = vand.u32 4294901760, %v7729_v10  ;;  %6984 = vmatpush3.bf16.msra.mxu0 %v7714_v61 }
  0x15   :  { %v206_v22 = vand.u32 4294901760, %v7734_v13  ;;  %6986 = vmatprep.subr.bf16.mxu0 %v7731_v11 }
  0x16   :  { %v7740_v23 = vpack.c.bf16 %v240_v18, %v233_v8  ;;  %6256 = vmatmul.mubr.f32.gmra.mrb[4].mxu0 %v186_v56  ;;  %v197_v26 = vsub.f32 %v7729_v10, %v196_v19 }
  0x17   :  { %6196 = vmatmul.mubr.f32.gmra.mrb[4].mxu1 %v188_v12  ;;  %v207_v28 = vsub.f32 %v7734_v13, %v206_v22  ;;  %6258 = vmatprep.mubr.f32.mxu0 %v196_v19 }
  0x18   :  { %6962 = vmatprep.subr.bf16.mxu1 %v7740_v23  ;;  %v198_v31 = vand.u32 4294901760, %v197_v26  ;;  %6988 = vmatpush3.bf16.msra.mxu0 %v7731_v11 }
  0x19   :  { %6964 = vmatpush3.bf16.msra.mxu1 %v7740_v23  ;;  %v208_v32 = vand.u32 4294901760, %v207_v28  ;;  %6990 = vmatprep.subr.bf16.mxu0 %v7628_v14 }
  0x1a   :  { %6198 = vmatprep.mubr.f32.mxu1 %v198_v31  ;;  %6259 = vmatmul.mubr.f32.gmra.mrb[6].mxu0 %v206_v22 }
  0x1b   :  { %6199 = vmatmul.mubr.f32.gmra.mrb[6].mxu1 %v208_v32  ;;  %6966 = vmatprep.subr.bf16.mxu1 %v7746_v30 }
  0x1c   :  { %6209 = vmatprep.mubr.f32.mxu1 %v7630_v15  ;;  %6269 = vmatprep.mubr.f32.mxu0 %v7630_v15 }
  0x1e   :  { %6270 = vmatmul.mubr.f32.vlgmr.msra.gmra.mrb[0].mxu0 %v7632_v16 }
  0x1f   :  { %6210 = vmatmul.mubr.f32.vlgmr.msra.gmra.mrb[0].mxu1 %v7632_v16  ;;  %6272 = vmatprep.mubr.f32.mxu0 %v7659_v27 }
  0x20   :  { %6968 = vmatpush3.bf16.msra.mxu1 %v7746_v30  ;;  %6212 = vmatprep.mubr.f32.mxu1 %v7659_v27 }
  0x21   :  { %6970 = vmatprep.subr.bf16.mxu1 %v7756_v17  ;;  %6992 = vmatpush3.bf16.msra.mxu0 %v7628_v14 }
  0x22   :  { %6273 = vmatmul.mubr.f32.gmra.mrb[2].mxu0 %v7664_v29  ;;  %6994 = vmatprep.subr.bf16.mxu0 %v7644_v20 }
  0x23   :  { %6213 = vmatmul.mubr.f32.gmra.mrb[2].mxu1 %v7664_v29  ;;  %6275 = vmatprep.mubr.f32.mxu0 %v7680_v38 }
  0x24   :  { %6215 = vmatprep.mubr.f32.mxu1 %v7680_v38  ;;  %6972 = vmatpush3.bf16.msra.mxu1 %v7756_v17 }
  0x25   :  { %6996 = vmatpush3.bf16.msra.mxu0 %v7644_v20  ;;  %6997 = vmatprep.subr.bf16.mxu1 %v7561_v21 }
  0x26   :  { %6276 = vmatmul.mubr.f32.gmra.mrb[4].mxu0 %v7682_v39  ;;  %7069 = vmatprep.subr.bf16.mxu0 %v7561_v21 }
  0x27   :  { %6216 = vmatmul.mubr.f32.gmra.mrb[4].mxu1 %v7682_v39  ;;  %6278 = vmatprep.mubr.f32.mxu0 %v7722_v4 }
  0x28   :  { %6218 = vmatprep.mubr.f32.mxu1 %v7722_v4 }
  0x2a   :  { %6279 = vmatmul.mubr.f32.gmra.mrb[6].mxu0 %v7726_v7 }
  0x2b   :  { %6219 = vmatmul.mubr.f32.gmra.mrb[6].mxu1 %v7726_v7  ;;  %6289 = vmatprep.mubr.f32.mxu0 %v7630_v15  ;;  %v7563_v15 = vmov 0.0  }
  0x2c   :  { %6229 = vmatprep.mubr.f32.mxu1 %v7653_v24 }
  0x2e   :  { %6290 = vmatmul.mubr.f32.vlgmr.msra.gmra.mrb[0].mxu0 %v7632_v16  ;;  %v5787_v16 = vld [vmem:[%s8413_s2] ss:$0 sm:$0xff]  ;;  %s7564_s2 = smov 64  }
  0x2f   :  { %6230 = vmatmul.mubr.f32.vlgmr.msra.gmra.mrb[0].mxu1 %v7656_v25  ;;  %6292 = vmatprep.mubr.f32.mxu0 %v7659_v27 }
  0x30   :  { %6999 = vmatpush3.bf16.msra.mxu1 %v7628_v14  ;;  %6232 = vmatprep.mubr.f32.mxu1 %v7674_v35 }
  0x31   :  { %7000 = vmatprep.subr.bf16.mxu1 %v7561_v21  ;;  %7071 = vmatpush3.bf16.msra.mxu0 %v7628_v14 }
  0x32   :  { %6293 = vmatmul.mubr.f32.gmra.mrb[2].mxu0 %v7664_v29  ;;  %7072 = vmatprep.subr.bf16.mxu0 %v7561_v21 }
  0x33   :  { %6233 = vmatmul.mubr.f32.gmra.mrb[2].mxu1 %v7678_v37  ;;  %6295 = vmatprep.mubr.f32.mxu0 %v7680_v38 }
  0x34   :  { %6235 = vmatprep.mubr.f32.mxu1 %v7691_v46  ;;  %7002 = vmatpush3.bf16.msra.mxu1 %v7644_v20 }
  0x35   :  { %7003 = vmatprep.subr.bf16.mxu1 %v7561_v21  ;;  %7074 = vmatpush3.bf16.msra.mxu0 %v7644_v20 }
  0x36   :  { %6296 = vmatmul.mubr.f32.gmra.mrb[4].mxu0 %v7682_v39  ;;  %7105 = vmatprep.subr.bf16.mxu0 %v7561_v21 }
  0x37   :  { %6236 = vmatmul.mubr.f32.gmra.mrb[4].mxu1 %v7694_v47  ;;  %6298 = vmatprep.mubr.f32.mxu0 %v7722_v4 }
  0x38   :  { %6238 = vmatprep.mubr.f32.mxu1 %v7729_v10 }
  0x3a   :  { %6299 = vmatmul.mubr.f32.gmra.mrb[6].mxu0 %v7726_v7 }
  0x3b   :  { %6239 = vmatmul.mubr.f32.gmra.mrb[6].mxu1 %v7734_v13  ;;  %6441 = vmatprep.mubr.msk.f32.mxu0 %vm7562_vm1, %v7563_v15 }
  0x3c   :  { %6309 = vmatprep.mubr.msk.f32.mxu1 %vm7562_vm1, %v7563_v15 }
  0x3f   :  { %6310 = vmatmul.mubr.f32.vlgmr.msra.gmra.mrb[8].mxu1 %v7563_v15 }
  0x40   :  { %7005 = vmatpush3.bf16.msra.mxu1 %v7702_v53  ;;  %6320 = vmatprep.mubr.msk.f32.mxu1 %vm7562_vm1, %v7563_v15 }
  0x41   :  { %7006 = vmatprep.subr.bf16.mxu1 %v7561_v21 }
  0x44   :  { %7008 = vmatpush3.bf16.msra.mxu1 %v7740_v23 }
  0x45   :  { %7009 = vmatprep.subr.bf16.mxu1 %v7561_v21 }
  0x47   :  { %6321 = vmatmul.mubr.f32.vlgmr.msra.gmra.mrb[10].mxu1 %v7563_v15 }
  0x48   :  { %7011 = vmatpush3.bf16.msra.mxu1 %v7746_v30  ;;  %6331 = vmatprep.mubr.msk.f32.mxu1 %vm7562_vm1, %v7563_v15 }
  0x49   :  { %7012 = vmatprep.subr.bf16.mxu1 %v7561_v21 }
  0x4c   :  { %7014 = vmatpush3.bf16.msra.mxu1 %v7756_v17 }
  0x4d   :  { %7015 = vmatprep.subr.bf16.mxu1 %v7561_v21 }
  0x4f   :  { %6332 = vmatmul.mubr.f32.vlgmr.msra.gmra.mrb[10].mxu1 %v7563_v15 }
  0x50   :  { %7017 = vmatpush3.bf16.msra.mxu1 %v7628_v14  ;;  %6342 = vmatprep.mubr.msk.f32.mxu1 %vm7562_vm1, %v7563_v15 }
  0x51   :  { %7018 = vmatprep.subr.bf16.mxu1 %v7561_v21 }
  0x54   :  { %7020 = vmatpush3.bf16.msra.mxu1 %v7644_v20 }
  0x55   :  { %7021 = vmatprep.subr.bf16.mxu1 %v7561_v21 }
  0x57   :  { %6343 = vmatmul.mubr.f32.vlgmr.msra.gmra.mrb[10].mxu1 %v7563_v15 }
  0x58   :  { %7023 = vmatpush3.bf16.msra.mxu1 %v7714_v61  ;;  %6353 = vmatprep.mubr.msk.f32.mxu1 %vm7562_vm1, %v7563_v15 }
  0x59   :  { %7024 = vmatprep.subr.bf16.mxu1 %v7561_v21 }
  0x5c   :  { %7026 = vmatpush3.bf16.msra.mxu1 %v7731_v11 }
  0x5d   :  { %7027 = vmatprep.subr.bf16.mxu1 %v7561_v21 }
  0x5f   :  { %6354 = vmatmul.mubr.f32.vlgmr.msra.gmra.mrb[10].mxu1 %v7563_v15 }
  0x60   :  { %7029 = vmatpush3.bf16.msra.mxu1 %v7628_v14  ;;  %6364 = vmatprep.mubr.msk.f32.mxu1 %vm7562_vm1, %v7563_v15 }
  0x61   :  { %7030 = vmatprep.subr.bf16.mxu1 %v7561_v21 }
  0x64   :  { %7032 = vmatpush3.bf16.msra.mxu1 %v7644_v20 }
  0x65   :  { %7033 = vmatprep.subr.bf16.mxu1 %v7561_v21 }
  0x67   :  { %6365 = vmatmul.mubr.f32.vlgmr.msra.gmra.mrb[10].mxu1 %v7563_v15 }
  0x68   :  { %7035 = vmatpush3.bf16.msra.mxu1 %v7628_v14  ;;  %6375 = vmatprep.mubr.msk.f32.mxu1 %vm7562_vm1, %v7563_v15 }
  0x69   :  { %7036 = vmatprep.subr.bf16.mxu1 %v7561_v21 }
  0x6c   :  { %7038 = vmatpush3.bf16.msra.mxu1 %v7644_v20 }
  0x6d   :  { %7039 = vmatprep.subr.bf16.mxu1 %v7561_v21 }
 0x101   :  { %v6291_v24 = vpop.f32.mrb[0].mxu0 }
 0x102   :  { %v6231_v25 = vpop.f32.mrb[0].mxu1  ;;  %v805_v27 = vpop.f32.mrb[1].mxu0 }
 0x103   :  { %v7333_v29 = vadd.f32 %v6231_v25, %v5787_v16  ;;  %v423_v33 = vpop.f32.mrb[1].mxu1 }
 0x104   :  { %v7335_v34 = vadd.f32 %v5787_v16, %v423_v33 }
 0x105   :  { %v7853_v35 = vadd.f32 %v7333_v29, %v6291_v24  ;;  %v6294_v36 = vpop.f32.mrb[2].mxu0 }
 0x106   :  { %v7336_v37 = vadd.f32 %v7335_v34, %v805_v27  ;;  %v6234_v38 = vpop.f32.mrb[2].mxu1  ;;  %v817_v39 = vpop.f32.mrb[3].mxu0 }
 0x107   :  { %v7337_v40 = vadd.f32 %v6234_v38, %v5787_v16  ;;  %v437_v41 = vpop.f32.mrb[3].mxu1 }
 0x108   :  { %v7339_v42 = vadd.f32 %v5787_v16, %v437_v41 }
 0x109   :  { %v7855_v43 = vadd.f32 %v7337_v40, %v6294_v36  ;;  %v6297_v44 = vpop.f32.mrb[4].mxu0 }
 0x10a   :  { %v7857_v45 = vadd.f32 %v7339_v42, %v817_v39  ;;  %v6237_v46 = vpop.f32.mrb[4].mxu1  ;;  %v829_v47 = vpop.f32.mrb[5].mxu0 }
 0x10b   :  { %v7341_v48 = vadd.f32 %v6237_v46, %v5787_v16  ;;  %v451_v49 = vpop.f32.mrb[5].mxu1 }
 0x10c   :  { %v7343_v50 = vadd.f32 %v5787_v16, %v451_v49 }
 0x10d   :  { %v7859_v51 = vadd.f32 %v7341_v48, %v6297_v44  ;;  %v6300_v52 = vpop.f32.mrb[6].mxu0 }
 0x10e   :  { %v7861_v54 = vadd.f32 %v7343_v50, %v829_v47  ;;  %v6240_v55 = vpop.f32.mrb[6].mxu1  ;;  %v841_v56 = vpop.f32.mrb[7].mxu0 }
 0x10f   :  { %v7345_v57 = vadd.f32 %v6240_v55, %v5787_v16  ;;  %v465_v58 = vpop.f32.mrb[7].mxu1 }
 0x110   :  { %v7347_v59 = vadd.f32 %v5787_v16, %v465_v58 }
 0x111   :  { %v7863_v60 = vadd.f32 %v7345_v57, %v6300_v52 }
 0x112   :  { %v7865_v62 = vadd.f32 %v7347_v59, %v841_v56  ;;  %v929_v63 = vpop.f32.mrb[8].mxu1 }
 0x113   :  { %v930_v0 = vadd.f32 %v7336_v37, %v929_v63  ;;  %v6311_v1 = vpop.f32.mrb[9].mxu1 }
 0x13a   :  { %v1335_v2 = vpop.f32.mrb[10].mxu1 }
 0x13b   :  { %v7349_v3 = vadd.f32 %v1335_v2, %v930_v0  ;;  %v6366_v4 = vpop.f32.mrb[11].mxu1 }
 0x13d   :  { %7473 = vtanh.f32 %v7349_v3  ;;  %v5788_v6 = vmul.f32 -1.442695, %v7349_v3 }
 0x13f   :  { %7475 = vpow2.f32 %v5788_v6 }
 0x147   :  { %v7474_v5 = vpop.eup %7473 }
 0x148   :  { %1348 = vrot.lane.b32.xlu0 %v7474_v5, %s7564_s2 }
 0x149   :  { %v7476_v7 = vpop.eup %7475 }
 0x14a   :  { %v1342_v8 = vadd.f32 1.0, %v7476_v7 }
 0x14c   :  { %7477 = vrcp.f32 %v1342_v8 }
 0x156   :  { %v7478_v9 = vpop.eup %7477 }
 0x157   :  { %v1346_v13 = vmul.f32 0.0, %v7478_v9 }
 0x1ba   :  { %v1349_v10 = vpop.permute.xlu0 %1348 }
 0x1bb   :  { %v1351_v12 = vmul.f32 %v7478_v9, %v1349_v10 }
 0x1bd   :  { %1353 = vrot.lane.b32.xlu0 %v1351_v12, %s7565_s17 }
 0x22f   :  { %v1354_v18 = vpop.permute.xlu0 %1353 }
 0x230   :  { %v7869_v19 = vadd.f32 %v1354_v18, %v1346_v13 }
 0x232   :  { %7479 = vtanh.f32 %v7869_v19 }
 0x23c   :  { %v7480_v22 = vpop.eup %7479 }
 0x23d   :  { %1359 = vrot.lane.b32.xlu1 %v7480_v22, %s7564_s2 }
 0x2af   :  { %v1360_v26 = vpop.permute.xlu1 %1359 }
 0x2b0   :  { %v1362_v28 = vmul.f32 %v7478_v9, %v1360_v26 }
 0x2b2   :  { %1364 = vrot.lane.b32.xlu1 %v1362_v28, %s7565_s17 }
 0x324   :  { %v1365_v31 = vpop.permute.xlu1 %1364 }
 0x325   :  { %v1366_v32 = vsel %vm40_vm0, %v1365_v31, 0 }
 0x326   :  { %v7875_v16 = vand.u32 4294901760, %v1366_v32 }
 0x328   :  { %v7878_v24 = vsub.f32 %v1366_v32, %v7875_v16 }
 0x32a   :  { %v7881_v25 = vand.u32 4294901760, %v7878_v24 }
 0x32c   :  { %v1440_v27 = vsub.f32 %v7878_v24, %v7881_v25 }
 0x32e   :  { %v7885_v29 = vand.u32 4294901760, %v1440_v27 }
 0x330   :  { %6376 = vmatmul.mubr.f32.vlgmr.msra.gmra.mrb[12].mxu1 %v7885_v29 }
 0x331   :  { %7041 = vmatpush3.bf16.msra.mxu1 %v7702_v53  ;;  %6386 = vmatprep.mubr.msk.f32.mxu1 %vm7562_vm1, %v7563_v15 }
 0x332   :  { %7042 = vmatprep.subr.bf16.mxu1 %v7561_v21 }
 0x335   :  { %7044 = vmatpush3.bf16.msra.mxu1 %v7740_v23 }
 0x336   :  { %7045 = vmatprep.subr.bf16.mxu1 %v7561_v21 }
 0x338   :  { %6387 = vmatmul.mubr.f32.vlgmr.msra.gmra.mrb[14].mxu1 %v7875_v16 }
 0x339   :  { %7047 = vmatpush3.bf16.msra.mxu1 %v7746_v30  ;;  %6397 = vmatprep.mubr.msk.f32.mxu1 %vm7562_vm1, %v7563_v15 }
 0x33a   :  { %7048 = vmatprep.subr.bf16.mxu1 %v7561_v21 }
 0x33d   :  { %7050 = vmatpush3.bf16.msra.mxu1 %v7756_v17 }
 0x33e   :  { %7051 = vmatprep.subr.bf16.mxu1 %v7561_v21 }
 0x340   :  { %6398 = vmatmul.mubr.f32.vlgmr.msra.gmra.mrb[16].mxu1 %v7878_v24 }
 0x341   :  { %7053 = vmatpush3.bf16.msra.mxu1 %v7628_v14  ;;  %6408 = vmatprep.mubr.msk.f32.mxu1 %vm7562_vm1, %v7563_v15 }
 0x342   :  { %7054 = vmatprep.subr.bf16.mxu1 %v7561_v21 }
 0x345   :  { %7056 = vmatpush3.bf16.msra.mxu1 %v7644_v20 }
 0x346   :  { %7057 = vmatprep.subr.bf16.mxu1 %v7561_v21 }
 0x348   :  { %6409 = vmatmul.mubr.f32.vlgmr.msra.gmra.mrb[18].mxu1 %v7881_v25 }
 0x349   :  { %7059 = vmatpush3.bf16.msra.mxu1 %v7714_v61  ;;  %6419 = vmatprep.mubr.msk.f32.mxu1 %vm7562_vm1, %v7563_v15 }
 0x34a   :  { %7060 = vmatprep.subr.bf16.mxu1 %v7561_v21 }
 0x34d   :  { %7062 = vmatpush3.bf16.msra.mxu1 %v7731_v11 }
 0x34e   :  { %7063 = vmatprep.subr.bf16.mxu1 %v7561_v21 }
 0x350   :  { %6420 = vmatmul.mubr.f32.vlgmr.msra.gmra.mrb[20].mxu1 %v7875_v16 }
 0x351   :  { %7065 = vmatpush3.bf16.msra.mxu1 %v7628_v14  ;;  %6430 = vmatprep.mubr.msk.f32.mxu1 %vm7562_vm1, %v7563_v15 }
 0x352   :  { %7066 = vmatprep.subr.bf16.mxu1 %v7561_v21 }
 0x355   :  { %7068 = vmatpush3.bf16.msra.mxu1 %v7644_v20 }
 0x356   :  { %7075 = vmatprep.subr.bf16.mxu1 %v7561_v21 }
 0x358   :  { %6431 = vmatmul.mubr.f32.vlgmr.msra.gmra.mrb[22].mxu1 %v7875_v16 }
 0x359   :  { %7077 = vmatpush3.bf16.msra.mxu1 %v7702_v53  ;;  %6452 = vmatprep.mubr.msk.f32.mxu1 %vm7562_vm1, %v7563_v15 }
 0x35a   :  { %7078 = vmatprep.subr.bf16.mxu1 %v7561_v21 }
 0x35d   :  { %7080 = vmatpush3.bf16.msra.mxu1 %v7740_v23 }
 0x35e   :  { %7081 = vmatprep.subr.bf16.mxu1 %v7561_v21 }
 0x403   :  { %v1443_v33 = vpop.f32.mrb[12].mxu1 }
 0x404   :  { %v1444_v34 = vadd.f32 %v7853_v35, %v1443_v33  ;;  %v6377_v36 = vpop.f32.mrb[13].mxu1 }
 0x40b   :  { %v1534_v37 = vpop.f32.mrb[14].mxu1 }
 0x40c   :  { %v1535_v38 = vadd.f32 %v1534_v37, %v1444_v34  ;;  %v6388_v39 = vpop.f32.mrb[15].mxu1 }
 0x413   :  { %v1614_v40 = vpop.f32.mrb[16].mxu1 }
 0x414   :  { %v1615_v41 = vadd.f32 %v1614_v40, %v1535_v38  ;;  %v6399_v42 = vpop.f32.mrb[17].mxu1 }
 0x41b   :  { %v1691_v44 = vpop.f32.mrb[18].mxu1 }
 0x41c   :  { %v1692_v46 = vadd.f32 %v1691_v44, %v1615_v41  ;;  %v6410_v47 = vpop.f32.mrb[19].mxu1 }
 0x423   :  { %v1774_v48 = vpop.f32.mrb[20].mxu1 }
 0x424   :  { %v1775_v49 = vadd.f32 %v1774_v48, %v1692_v46  ;;  %v6421_v50 = vpop.f32.mrb[21].mxu1 }
 0x42b   :  { %v1849_v52 = vpop.f32.mrb[22].mxu1 }
 0x42c   :  { %v1850_v55 = vadd.f32 %v1849_v52, %v1775_v49  ;;  %v6432_v56 = vpop.f32.mrb[23].mxu1 }
 0x42e   :  { %7481 = vtanh.f32 %v1850_v55  ;;  %v5789_v35 = vmul.f32 -1.442695, %v1850_v55 }
 0x430   :  { %7483 = vpow2.f32 %v5789_v35 }
 0x438   :  { %v7482_v57 = vpop.eup %7481 }
 0x439   :  { %1862 = vrot.lane.b32.xlu0 %v7482_v57, %s7564_s2 }
 0x43a   :  { %v7484_v58 = vpop.eup %7483 }
 0x43b   :  { %v1856_v59 = vadd.f32 1.0, %v7484_v58 }
 0x43d   :  { %7485 = vrcp.f32 %v1856_v59 }
 0x447   :  { %v7486_v63 = vpop.eup %7485 }
 0x448   :  { %v1860_v2 = vmul.f32 %v7486_v63, %v7869_v19 }
 0x4ab   :  { %v1863_v0 = vpop.permute.xlu0 %1862 }
 0x4ac   :  { %v1865_v1 = vmul.f32 %v7486_v63, %v1863_v0 }
 0x4ae   :  { %1867 = vrot.lane.b32.xlu1 %v1865_v1, %s7565_s17 }
 0x520   :  { %v1868_v3 = vpop.permute.xlu1 %1867 }
 0x521   :  { %v7933_v4 = vadd.f32 %v1868_v3, %v1860_v2 }
 0x523   :  { %7487 = vtanh.f32 %v7933_v4 }
 0x52d   :  { %v7488_v5 = vpop.eup %7487 }
 0x52e   :  { %1873 = vrot.lane.b32.xlu0 %v7488_v5, %s7564_s2 }
 0x5a0   :  { %v1874_v6 = vpop.permute.xlu0 %1873 }
 0x5a1   :  { %v1876_v7 = vmul.f32 %v7486_v63, %v1874_v6 }
 0x5a3   :  { %1878 = vrot.lane.b32.xlu1 %v1876_v7, %s7565_s17 }
 0x615   :  { %v1879_v8 = vpop.permute.xlu1 %1878 }
 0x616   :  { %v1880_v9 = vsel %vm40_vm0, %v1879_v8, 0 }
 0x617   :  { %v7939_v10 = vand.u32 4294901760, %v1880_v9 }
 0x619   :  { %v7942_v12 = vsub.f32 %v1880_v9, %v7939_v10  ;;  %6453 = vmatmul.mubr.f32.vlgmr.msra.gmra.mrb[24].mxu1 %v7939_v10 }
 0x61a   :  { %7083 = vmatpush3.bf16.msra.mxu1 %v7746_v30  ;;  %6463 = vmatprep.mubr.msk.f32.mxu1 %vm7562_vm1, %v7563_v15 }
 0x61b   :  { %v7949_v13 = vand.u32 4294901760, %v7942_v12  ;;  %7084 = vmatprep.subr.bf16.mxu1 %v7561_v21 }
 0x61d   :  { %v1954_v18 = vsub.f32 %v7942_v12, %v7949_v13 }
 0x61e   :  { %7086 = vmatpush3.bf16.msra.mxu1 %v7756_v17 }
 0x61f   :  { %v7955_v19 = vand.u32 4294901760, %v1954_v18  ;;  %7087 = vmatprep.subr.bf16.mxu1 %v7561_v21 }
 0x621   :  { %6442 = vmatmul.mubr.f32.vlgmr.msra.gmra.mrb[8].mxu0 %v7955_v19  ;;  %6464 = vmatmul.mubr.f32.vlgmr.msra.gmra.mrb[24].mxu1 %v7942_v12 }
 0x622   :  { %7089 = vmatpush3.bf16.msra.mxu1 %v7628_v14  ;;  %6474 = vmatprep.mubr.msk.f32.mxu1 %vm7562_vm1, %v7563_v15 }
 0x623   :  { %7090 = vmatprep.subr.bf16.mxu1 %v7561_v21  ;;  %7107 = vmatpush3.bf16.msra.mxu0 %v7628_v14 }
 0x624   :  { %7108 = vmatprep.subr.bf16.mxu0 %v7561_v21  ;;  %6507 = vmatprep.mubr.msk.f32.mxu0 %vm7562_vm1, %v7563_v15 }
 0x626   :  { %7092 = vmatpush3.bf16.msra.mxu1 %v7644_v20 }
 0x627   :  { %7093 = vmatprep.subr.bf16.mxu1 %v7561_v21  ;;  %7110 = vmatpush3.bf16.msra.mxu0 %v7644_v20 }
 0x628   :  { %7111 = vmatprep.subr.bf16.mxu0 %v7561_v21 }
 0x629   :  { %6475 = vmatmul.mubr.f32.vlgmr.msra.gmra.mrb[24].mxu1 %v7949_v13 }
 0x62a   :  { %7095 = vmatpush3.bf16.msra.mxu1 %v7714_v61  ;;  %6485 = vmatprep.mubr.msk.f32.mxu1 %vm7562_vm1, %v7563_v15 }
 0x62b   :  { %7096 = vmatprep.subr.bf16.mxu1 %v7561_v21 }
 0x62e   :  { %7098 = vmatpush3.bf16.msra.mxu1 %v7731_v11 }
 0x62f   :  { %7099 = vmatprep.subr.bf16.mxu1 %v7561_v21 }
 0x631   :  { %6486 = vmatmul.mubr.f32.vlgmr.msra.gmra.mrb[24].mxu1 %v7939_v10 }
 0x632   :  { %7101 = vmatpush3.bf16.msra.mxu1 %v7628_v14  ;;  %6496 = vmatprep.mubr.msk.f32.mxu1 %vm7562_vm1, %v7563_v15 }
 0x633   :  { %7102 = vmatprep.subr.bf16.mxu1 %v7561_v21 }
 0x636   :  { %7104 = vmatpush3.bf16.msra.mxu1 %v7644_v20 }
 0x637   :  { %7135 = vmatprep.subr.bf16.mxu1 %v7561_v21 }
 0x639   :  { %6497 = vmatmul.mubr.f32.vlgmr.msra.gmra.mrb[24].mxu1 %v7939_v10 }
 0x63a   :  { %7137 = vmatpush3.bf16.msra.mxu1 %v7628_v14  ;;  %6562 = vmatprep.mubr.msk.f32.mxu1 %vm7562_vm1, %v7563_v15 }
 0x63b   :  { %7138 = vmatprep.subr.bf16.mxu1 %v7561_v21 }
 0x63e   :  { %7140 = vmatpush3.bf16.msra.mxu1 %v7644_v20 }
 0x63f   :  { %7147 = vmatprep.subr.bf16.mxu1 %v7561_v21 }
 0x6f4   :  { %v1957_v22 = vpop.f32.mrb[8].mxu0 }
 0x6f5   :  { %v1958_v26 = vadd.f32 %v7857_v45, %v1957_v22  ;;  %v6443_v28 = vpop.f32.mrb[9].mxu0 }
 0x70c   :  { %v2363_v31 = vpop.f32.mrb[24].mxu1 }
 0x70d   :  { %v7350_v32 = vadd.f32 %v2363_v31, %v1958_v26  ;;  %v6498_v27 = vpop.f32.mrb[25].mxu1 }
 0x70f   :  { %7489 = vtanh.f32 %v7350_v32  ;;  %v5790_v34 = vmul.f32 -1.442695, %v7350_v32 }
 0x711   :  { %7491 = vpow2.f32 %v5790_v34 }
 0x719   :  { %v7490_v33 = vpop.eup %7489 }
 0x71a   :  { %2376 = vrot.lane.b32.xlu0 %v7490_v33, %s7564_s2 }
 0x71b   :  { %v7492_v36 = vpop.eup %7491 }
 0x71c   :  { %v2370_v37 = vadd.f32 1.0, %v7492_v36 }
 0x71e   :  { %7493 = vrcp.f32 %v2370_v37 }
 0x728   :  { %v7494_v38 = vpop.eup %7493 }
 0x729   :  { %v2374_v45 = vmul.f32 %v7494_v38, %v7933_v4 }
 0x78c   :  { %v2377_v39 = vpop.permute.xlu0 %2376 }
 0x78d   :  { %v2379_v40 = vmul.f32 %v7494_v38, %v2377_v39 }
 0x78f   :  { %2381 = vrot.lane.b32.xlu1 %v2379_v40, %s7565_s17 }
 0x801   :  { %v2382_v41 = vpop.permute.xlu1 %2381 }
 0x802   :  { %v7997_v42 = vadd.f32 %v2382_v41, %v2374_v45 }
 0x804   :  { %7495 = vtanh.f32 %v7997_v42 }
 0x80e   :  { %v7496_v44 = vpop.eup %7495 }
 0x80f   :  { %2387 = vrot.lane.b32.xlu0 %v7496_v44, %s7564_s2 }
 0x881   :  { %v2388_v46 = vpop.permute.xlu0 %2387 }
 0x882   :  { %v2390_v47 = vmul.f32 %v7494_v38, %v2388_v46 }
 0x884   :  { %2392 = vrot.lane.b32.xlu1 %v2390_v47, %s7565_s17 }
 0x8f6   :  { %v2393_v48 = vpop.permute.xlu1 %2392 }
 0x8f7   :  { %v2394_v49 = vsel %vm40_vm0, %v2393_v48, 0 }
 0x8f8   :  { %v8003_v50 = vand.u32 4294901760, %v2394_v49 }
 0x8fa   :  { %v8006_v52 = vsub.f32 %v2394_v49, %v8003_v50  ;;  %6563 = vmatmul.mubr.f32.vlgmr.msra.gmra.mrb[26].mxu1 %v8003_v50 }
 0x8fb   :  { %7149 = vmatpush3.bf16.msra.mxu1 %v7702_v53  ;;  %6584 = vmatprep.mubr.msk.f32.mxu1 %vm7562_vm1, %v7563_v15 }
 0x8fc   :  { %v8013_v55 = vand.u32 4294901760, %v8006_v52  ;;  %7150 = vmatprep.subr.bf16.mxu1 %v7561_v21 }
 0x8fe   :  { %v2468_v56 = vsub.f32 %v8006_v52, %v8013_v55 }
 0x8ff   :  { %7152 = vmatpush3.bf16.msra.mxu1 %v7740_v23 }
 0x900   :  { %v8019_v57 = vand.u32 4294901760, %v2468_v56  ;;  %7153 = vmatprep.subr.bf16.mxu1 %v7561_v21 }
 0x902   :  { %6508 = vmatmul.mubr.f32.vlgmr.msra.gmra.mrb[10].mxu0 %v8019_v57 }
 0x903   :  { %7113 = vmatpush3.bf16.msra.mxu0 %v7702_v53  ;;  %6518 = vmatprep.mubr.msk.f32.mxu0 %vm7562_vm1, %v7563_v15 }
 0x904   :  { %7114 = vmatprep.subr.bf16.mxu0 %v7561_v21 }
 0x907   :  { %7116 = vmatpush3.bf16.msra.mxu0 %v7740_v23 }
 0x908   :  { %7117 = vmatprep.subr.bf16.mxu0 %v7561_v21 }
 0x90a   :  { %6519 = vmatmul.mubr.f32.vlgmr.msra.gmra.mrb[12].mxu0 %v8003_v50 }
 0x90b   :  { %7119 = vmatpush3.bf16.msra.mxu0 %v7746_v30  ;;  %6529 = vmatprep.mubr.msk.f32.mxu0 %vm7562_vm1, %v7563_v15 }
 0x90c   :  { %7120 = vmatprep.subr.bf16.mxu0 %v7561_v21 }
 0x90f   :  { %7122 = vmatpush3.bf16.msra.mxu0 %v7756_v17 }
 0x910   :  { %7123 = vmatprep.subr.bf16.mxu0 %v7561_v21 }
 0x912   :  { %6530 = vmatmul.mubr.f32.vlgmr.msra.gmra.mrb[14].mxu0 %v8006_v52 }
 0x913   :  { %7125 = vmatpush3.bf16.msra.mxu0 %v7628_v14  ;;  %6540 = vmatprep.mubr.msk.f32.mxu0 %vm7562_vm1, %v7563_v15 }
 0x914   :  { %7126 = vmatprep.subr.bf16.mxu0 %v7561_v21 }
 0x917   :  { %7128 = vmatpush3.bf16.msra.mxu0 %v7644_v20 }
 0x918   :  { %7129 = vmatprep.subr.bf16.mxu0 %v7561_v21 }
 0x91a   :  { %6541 = vmatmul.mubr.f32.vlgmr.msra.gmra.mrb[16].mxu0 %v8013_v55 }
 0x91b   :  { %7131 = vmatpush3.bf16.msra.mxu0 %v7714_v61  ;;  %6551 = vmatprep.mubr.msk.f32.mxu0 %vm7562_vm1, %v7563_v15 }
 0x91c   :  { %7132 = vmatprep.subr.bf16.mxu0 %v7561_v21 }
 0x91f   :  { %7134 = vmatpush3.bf16.msra.mxu0 %v7731_v11 }
 0x920   :  { %7141 = vmatprep.subr.bf16.mxu0 %v7561_v21 }
 0x922   :  { %6552 = vmatmul.mubr.f32.vlgmr.msra.gmra.mrb[18].mxu0 %v8003_v50 }
 0x923   :  { %7143 = vmatpush3.bf16.msra.mxu0 %v7628_v14  ;;  %6573 = vmatprep.mubr.msk.f32.mxu0 %vm7562_vm1, %v7563_v15 }
 0x924   :  { %7144 = vmatprep.subr.bf16.mxu0 %v7561_v21 }
 0x927   :  { %7146 = vmatpush3.bf16.msra.mxu0 %v7644_v20 }
 0x928   :  { %7177 = vmatprep.subr.bf16.mxu0 %v7561_v21 }
 0x9cd   :  { %v2877_v35 = vpop.f32.mrb[26].mxu1 }
 0x9ce   :  { %v6564_v58 = vpop.f32.mrb[27].mxu1 }
 0x9d5   :  { %v2471_v59 = vpop.f32.mrb[10].mxu0 }
 0x9d6   :  { %v2472_v63 = vadd.f32 %v7855_v43, %v2471_v59  ;;  %v6509_v0 = vpop.f32.mrb[11].mxu0 }
 0x9dd   :  { %v2562_v1 = vpop.f32.mrb[12].mxu0 }
 0x9de   :  { %v2563_v2 = vadd.f32 %v2562_v1, %v2472_v63  ;;  %v6520_v3 = vpop.f32.mrb[13].mxu0 }
 0x9e5   :  { %v2642_v4 = vpop.f32.mrb[14].mxu0 }
 0x9e6   :  { %v2643_v5 = vadd.f32 %v2642_v4, %v2563_v2  ;;  %v6531_v6 = vpop.f32.mrb[15].mxu0 }
 0x9ed   :  { %v2719_v7 = vpop.f32.mrb[16].mxu0 }
 0x9ee   :  { %v2720_v8 = vadd.f32 %v2719_v7, %v2643_v5  ;;  %v6542_v9 = vpop.f32.mrb[17].mxu0 }
 0x9f5   :  { %v2802_v18 = vpop.f32.mrb[18].mxu0 }
 0x9f6   :  { %v2803_v22 = vadd.f32 %v2802_v18, %v2720_v8  ;;  %v6553_v26 = vpop.f32.mrb[19].mxu0 }
 0x9f8   :  { %v2878_v28 = vadd.f32 %v2877_v35, %v2803_v22 }
 0x9fa   :  { %7497 = vtanh.f32 %v2878_v28  ;;  %v5791_v32 = vmul.f32 -1.442695, %v2878_v28 }
 0x9fc   :  { %7499 = vpow2.f32 %v5791_v32 }
 0xa04   :  { %v7498_v31 = vpop.eup %7497 }
 0xa05   :  { %2890 = vrot.lane.b32.xlu0 %v7498_v31, %s7564_s2 }
 0xa06   :  { %v7500_v43 = vpop.eup %7499 }
 0xa07   :  { %v2884_v27 = vadd.f32 1.0, %v7500_v43 }
 0xa09   :  { %7501 = vrcp.f32 %v2884_v27 }
 0xa13   :  { %v7502_v33 = vpop.eup %7501 }
 0xa14   :  { %v2888_v37 = vmul.f32 %v7502_v33, %v7997_v42 }
 0xa77   :  { %v2891_v34 = vpop.permute.xlu0 %2890 }
 0xa78   :  { %v2893_v36 = vmul.f32 %v7502_v33, %v2891_v34 }
 0xa7a   :  { %2895 = vrot.lane.b32.xlu1 %v2893_v36, %s7565_s17 }
 0xaec   :  { %v2896_v38 = vpop.permute.xlu1 %2895 }
 0xaed   :  { %v8061_v39 = vadd.f32 %v2896_v38, %v2888_v37 }
 0xaef   :  { %7503 = vtanh.f32 %v8061_v39 }
 0xaf9   :  { %v7504_v40 = vpop.eup %7503 }
 0xafa   :  { %2901 = vrot.lane.b32.xlu0 %v7504_v40, %s7564_s2 }
 0xb6c   :  { %v2902_v45 = vpop.permute.xlu0 %2901 }
 0xb6d   :  { %v2904_v41 = vmul.f32 %v7502_v33, %v2902_v45 }
 0xb6f   :  { %2906 = vrot.lane.b32.xlu1 %v2904_v41, %s7565_s17 }
 0xbe1   :  { %v2907_v44 = vpop.permute.xlu1 %2906 }
 0xbe2   :  { %v2908_v46 = vsel %vm40_vm0, %v2907_v44, 0 }
 0xbe3   :  { %v8067_v47 = vand.u32 4294901760, %v2908_v46 }
 0xbe5   :  { %v8070_v48 = vsub.f32 %v2908_v46, %v8067_v47  ;;  %6585 = vmatmul.mubr.f32.vlgmr.msra.gmra.mrb[28].mxu1 %v8067_v47 }
 0xbe6   :  { %7155 = vmatpush3.bf16.msra.mxu1 %v7746_v30  ;;  %6595 = vmatprep.mubr.msk.f32.mxu1 %vm7562_vm1, %v7563_v15 }
 0xbe7   :  { %v8077_v42 = vand.u32 4294901760, %v8070_v48  ;;  %7156 = vmatprep.subr.bf16.mxu1 %v7561_v21 }
 0xbe9   :  { %v2982_v49 = vsub.f32 %v8070_v48, %v8077_v42 }
 0xbea   :  { %7158 = vmatpush3.bf16.msra.mxu1 %v7756_v17 }
 0xbeb   :  { %v8083_v56 = vand.u32 4294901760, %v2982_v49  ;;  %7159 = vmatprep.subr.bf16.mxu1 %v7561_v21 }
 0xbed   :  { %6574 = vmatmul.mubr.f32.vlgmr.msra.gmra.mrb[20].mxu0 %v8083_v56  ;;  %6596 = vmatmul.mubr.f32.vlgmr.msra.gmra.mrb[28].mxu1 %v8070_v48 }
 0xbee   :  { %7161 = vmatpush3.bf16.msra.mxu1 %v7628_v14  ;;  %6606 = vmatprep.mubr.msk.f32.mxu1 %vm7562_vm1, %v7563_v15 }
 0xbef   :  { %7162 = vmatprep.subr.bf16.mxu1 %v7561_v21  ;;  %7179 = vmatpush3.bf16.msra.mxu0 %v7628_v14 }
 0xbf0   :  { %7180 = vmatprep.subr.bf16.mxu0 %v7561_v21  ;;  %6639 = vmatprep.mubr.msk.f32.mxu0 %vm7562_vm1, %v7563_v15 }
 0xbf2   :  { %7164 = vmatpush3.bf16.msra.mxu1 %v7644_v20 }
 0xbf3   :  { %7165 = vmatprep.subr.bf16.mxu1 %v7561_v21  ;;  %7182 = vmatpush3.bf16.msra.mxu0 %v7644_v20 }
 0xbf4   :  { %7183 = vmatprep.subr.bf16.mxu0 %v7561_v21 }
 0xbf5   :  { %6607 = vmatmul.mubr.f32.vlgmr.msra.gmra.mrb[28].mxu1 %v8077_v42 }
 0xbf6   :  { %7167 = vmatpush3.bf16.msra.mxu1 %v7714_v61  ;;  %6617 = vmatprep.mubr.msk.f32.mxu1 %vm7562_vm1, %v7563_v15 }
 0xbf7   :  { %7168 = vmatprep.subr.bf16.mxu1 %v7561_v21 }
 0xbfa   :  { %7170 = vmatpush3.bf16.msra.mxu1 %v7731_v11 }
 0xbfb   :  { %7171 = vmatprep.subr.bf16.mxu1 %v7561_v21 }
 0xbfd   :  { %6618 = vmatmul.mubr.f32.vlgmr.msra.gmra.mrb[28].mxu1 %v8067_v47 }
 0xbfe   :  { %7173 = vmatpush3.bf16.msra.mxu1 %v7628_v14  ;;  %6628 = vmatprep.mubr.msk.f32.mxu1 %vm7562_vm1, %v7563_v15 }
 0xbff   :  { %7174 = vmatprep.subr.bf16.mxu1 %v7561_v21 }
 0xc02   :  { %7176 = vmatpush3.bf16.msra.mxu1 %v7644_v20 }
 0xc03   :  { %7207 = vmatprep.subr.bf16.mxu1 %v7561_v21 }
 0xc05   :  { %6629 = vmatmul.mubr.f32.vlgmr.msra.gmra.mrb[28].mxu1 %v8067_v47 }
 0xc06   :  { %7209 = vmatpush3.bf16.msra.mxu1 %v7628_v14  ;;  %6694 = vmatprep.mubr.msk.f32.mxu1 %vm7562_vm1, %v7563_v15 }
 0xc07   :  { %7210 = vmatprep.subr.bf16.mxu1 %v7561_v21 }
 0xc0a   :  { %7212 = vmatpush3.bf16.msra.mxu1 %v7644_v20 }
 0xc0b   :  { %7219 = vmatprep.subr.bf16.mxu1 %v7561_v21 }
 0xcc0   :  { %v2985_v35 = vpop.f32.mrb[20].mxu0 }
 0xcc1   :  { %v2986_v58 = vadd.f32 %v7861_v54, %v2985_v35  ;;  %v6575_v59 = vpop.f32.mrb[21].mxu0 }
 0xcd8   :  { %v3391_v63 = vpop.f32.mrb[28].mxu1 }
 0xcd9   :  { %v7351_v0 = vadd.f32 %v3391_v63, %v2986_v58  ;;  %v6630_v1 = vpop.f32.mrb[29].mxu1 }
 0xcdb   :  { %7505 = vtanh.f32 %v7351_v0  ;;  %v5792_v3 = vmul.f32 -1.442695, %v7351_v0 }
 0xcdd   :  { %7507 = vpow2.f32 %v5792_v3 }
 0xce5   :  { %v7506_v2 = vpop.eup %7505 }
 0xce6   :  { %3404 = vrot.lane.b32.xlu0 %v7506_v2, %s7564_s2 }
 0xce7   :  { %v7508_v4 = vpop.eup %7507 }
 0xce8   :  { %v3398_v5 = vadd.f32 1.0, %v7508_v4 }
 0xcea   :  { %7509 = vrcp.f32 %v3398_v5 }
 0xcf4   :  { %v7510_v6 = vpop.eup %7509 }
 0xcf5   :  { %v3402_v54 = vmul.f32 %v7510_v6, %v8061_v39 }
 0xd58   :  { %v3405_v7 = vpop.permute.xlu0 %3404 }
 0xd59   :  { %v3407_v8 = vmul.f32 %v7510_v6, %v3405_v7 }
 0xd5b   :  { %3409 = vrot.lane.b32.xlu1 %v3407_v8, %s7565_s17 }
 0xdcd   :  { %v3410_v9 = vpop.permute.xlu1 %3409 }
 0xdce   :  { %v8125_v18 = vadd.f32 %v3410_v9, %v3402_v54 }
 0xdd0   :  { %7511 = vtanh.f32 %v8125_v18 }
 0xdda   :  { %v7512_v22 = vpop.eup %7511 }
 0xddb   :  { %3415 = vrot.lane.b32.xlu0 %v7512_v22, %s7564_s2 }
 0xe4d   :  { %v3416_v26 = vpop.permute.xlu0 %3415 }
 0xe4e   :  { %v3418_v28 = vmul.f32 %v7510_v6, %v3416_v26 }
 0xe50   :  { %3420 = vrot.lane.b32.xlu1 %v3418_v28, %s7565_s17 }
 0xec2   :  { %v3421_v31 = vpop.permute.xlu1 %3420 }
 0xec3   :  { %v3422_v32 = vsel %vm40_vm0, %v3421_v31, 0 }
 0xec4   :  { %v8131_v43 = vand.u32 4294901760, %v3422_v32 }
 0xec6   :  { %v8134_v27 = vsub.f32 %v3422_v32, %v8131_v43  ;;  %6695 = vmatmul.mubr.f32.vlgmr.msra.gmra.mrb[30].mxu1 %v8131_v43 }
 0xec7   :  { %7221 = vmatpush3.bf16.msra.mxu1 %v7702_v53  ;;  %6716 = vmatprep.mubr.msk.f32.mxu1 %vm7562_vm1, %v7563_v15 }
 0xec8   :  { %v8141_v33 = vand.u32 4294901760, %v8134_v27  ;;  %7222 = vmatprep.subr.bf16.mxu1 %v7561_v21 }
 0xeca   :  { %v3496_v34 = vsub.f32 %v8134_v27, %v8141_v33 }
 0xecb   :  { %7224 = vmatpush3.bf16.msra.mxu1 %v7740_v23 }
 0xecc   :  { %v8147_v36 = vand.u32 4294901760, %v3496_v34  ;;  %7225 = vmatprep.subr.bf16.mxu1 %v7561_v21 }
 0xece   :  { %6640 = vmatmul.mubr.f32.vlgmr.msra.gmra.mrb[22].mxu0 %v8147_v36 }
 0xecf   :  { %7185 = vmatpush3.bf16.msra.mxu0 %v7702_v53  ;;  %6650 = vmatprep.mubr.msk.f32.mxu0 %vm7562_vm1, %v7563_v15 }
 0xed0   :  { %7186 = vmatprep.subr.bf16.mxu0 %v7561_v21 }
 0xed3   :  { %7188 = vmatpush3.bf16.msra.mxu0 %v7740_v23 }
 0xed4   :  { %7189 = vmatprep.subr.bf16.mxu0 %v7561_v21 }
 0xed6   :  { %6651 = vmatmul.mubr.f32.vlgmr.msra.gmra.mrb[24].mxu0 %v8131_v43 }
 0xed7   :  { %7191 = vmatpush3.bf16.msra.mxu0 %v7746_v30  ;;  %6661 = vmatprep.mubr.msk.f32.mxu0 %vm7562_vm1, %v7563_v15 }
 0xed8   :  { %7192 = vmatprep.subr.bf16.mxu0 %v7561_v21 }
 0xedb   :  { %7194 = vmatpush3.bf16.msra.mxu0 %v7756_v17 }
 0xedc   :  { %7195 = vmatprep.subr.bf16.mxu0 %v7561_v21 }
 0xede   :  { %6662 = vmatmul.mubr.f32.vlgmr.msra.gmra.mrb[26].mxu0 %v8134_v27 }
 0xedf   :  { %7197 = vmatpush3.bf16.msra.mxu0 %v7628_v14  ;;  %6672 = vmatprep.mubr.msk.f32.mxu0 %vm7562_vm1, %v7563_v15 }
 0xee0   :  { %7198 = vmatprep.subr.bf16.mxu0 %v7561_v21 }
 0xee3   :  { %7200 = vmatpush3.bf16.msra.mxu0 %v7644_v20 }
 0xee4   :  { %7201 = vmatprep.subr.bf16.mxu0 %v7561_v21 }
 0xee6   :  { %6673 = vmatmul.mubr.f32.vlgmr.msra.gmra.mrb[28].mxu0 %v8141_v33 }
 0xee7   :  { %7203 = vmatpush3.bf16.msra.mxu0 %v7714_v61  ;;  %6683 = vmatprep.mubr.msk.f32.mxu0 %vm7562_vm1, %v7563_v15 }
 0xee8   :  { %7204 = vmatprep.subr.bf16.mxu0 %v7561_v21 }
 0xeeb   :  { %7206 = vmatpush3.bf16.msra.mxu0 %v7731_v11 }
 0xeec   :  { %7213 = vmatprep.subr.bf16.mxu0 %v7561_v21 }
 0xeee   :  { %6684 = vmatmul.mubr.f32.vlgmr.msra.gmra.mrb[30].mxu0 %v8131_v43 }
 0xeef   :  { %7215 = vmatpush3.bf16.msra.mxu0 %v7628_v14  ;;  %6705 = vmatprep.mubr.msk.f32.mxu0 %vm7562_vm1, %v7563_v15 }
 0xef0   :  { %7216 = vmatprep.subr.bf16.mxu0 %v7561_v21 }
 0xef3   :  { %7218 = vmatpush3.bf16.msra.mxu0 %v7644_v20 }
 0xef4   :  { %7249 = vmatprep.subr.bf16.mxu0 %v7561_v21 }
 0xf99   :  { %v3905_v37 = vpop.f32.mrb[30].mxu1 }
 0xf9a   :  { %v6696_v38 = vpop.f32.mrb[31].mxu1 }
 0xfa1   :  { %v3499_v39 = vpop.f32.mrb[22].mxu0 }
 0xfa2   :  { %v3500_v40 = vadd.f32 %v7859_v51, %v3499_v39  ;;  %v6641_v45 = vpop.f32.mrb[23].mxu0 }
 0xfa9   :  { %v3590_v41 = vpop.f32.mrb[24].mxu0 }
 0xfaa   :  { %v3591_v44 = vadd.f32 %v3590_v41, %v3500_v40  ;;  %v6652_v46 = vpop.f32.mrb[25].mxu0 }
 0xfb1   :  { %v3670_v49 = vpop.f32.mrb[26].mxu0 }
 0xfb2   :  { %v3671_v35 = vadd.f32 %v3670_v49, %v3591_v44  ;;  %v6663_v58 = vpop.f32.mrb[27].mxu0 }
 0xfb9   :  { %v3747_v59 = vpop.f32.mrb[28].mxu0 }
 0xfba   :  { %v3748_v63 = vadd.f32 %v3747_v59, %v3671_v35  ;;  %v6674_v0 = vpop.f32.mrb[29].mxu0 }
 0xfc1   :  { %v3830_v1 = vpop.f32.mrb[30].mxu0 }
 0xfc2   :  { %v3831_v2 = vadd.f32 %v3830_v1, %v3748_v63  ;;  %v6685_v3 = vpop.f32.mrb[31].mxu0 }
 0xfc4   :  { %v3906_v4 = vadd.f32 %v3905_v37, %v3831_v2 }
 0xfc6   :  { %7513 = vtanh.f32 %v3906_v4  ;;  %v5793_v6 = vmul.f32 -1.442695, %v3906_v4 }
 0xfc8   :  { %7515 = vpow2.f32 %v5793_v6 }
 0xfd0   :  { %v7514_v5 = vpop.eup %7513 }
 0xfd1   :  { %3918 = vrot.lane.b32.xlu0 %v7514_v5, %s7564_s2 }
 0xfd2   :  { %v7516_v51 = vpop.eup %7515 }
 0xfd3   :  { %v3912_v7 = vadd.f32 1.0, %v7516_v51 }
 0xfd5   :  { %7517 = vrcp.f32 %v3912_v7 }
 0xfdf   :  { %v7518_v8 = vpop.eup %7517 }
 0xfe0   :  { %v3916_v22 = vmul.f32 %v7518_v8, %v8125_v18 }
0x1043   :  { %v3919_v54 = vpop.permute.xlu0 %3918 }
0x1044   :  { %v3921_v9 = vmul.f32 %v7518_v8, %v3919_v54 }
0x1046   :  { %3923 = vrot.lane.b32.xlu1 %v3921_v9, %s7565_s17 }
0x10b8   :  { %v3924_v26 = vpop.permute.xlu1 %3923 }
0x10b9   :  { %v8189_v28 = vadd.f32 %v3924_v26, %v3916_v22 }
0x10bb   :  { %7519 = vtanh.f32 %v8189_v28 }
0x10c5   :  { %v7520_v31 = vpop.eup %7519 }
0x10c6   :  { %3929 = vrot.lane.b32.xlu0 %v7520_v31, %s7564_s2 }
0x1138   :  { %v3930_v32 = vpop.permute.xlu0 %3929 }
0x1139   :  { %v3932_v34 = vmul.f32 %v7518_v8, %v3930_v32 }
0x113b   :  { %3934 = vrot.lane.b32.xlu1 %v3932_v34, %s7565_s17 }
0x11ad   :  { %v3935_v37 = vpop.permute.xlu1 %3934 }
0x11ae   :  { %v3936_v38 = vsel %vm40_vm0, %v3935_v37, 0  ;;  %v8309_v37 = vld [vmem:[%s8414_s3 + $0x18] sm:$0xff] }
0x11af   :  { %v8195_v39 = vand.u32 4294901760, %v3936_v38 }
0x11b1   :  { %v8198_v40 = vsub.f32 %v3936_v38, %v8195_v39  ;;  %6717 = vmatmul.mubr.f32.vlgmr.msra.gmra.mrb[32].mxu1 %v8195_v39 }
0x11b2   :  { %7227 = vmatpush3.bf16.msra.mxu1 %v7746_v30  ;;  %6727 = vmatprep.mubr.msk.f32.mxu1 %vm7562_vm1, %v7563_v15 }
0x11b3   :  { %v8205_v18 = vand.u32 4294901760, %v8198_v40  ;;  %7228 = vmatprep.subr.bf16.mxu1 %v7561_v21 }
0x11b5   :  { %v4010_v45 = vsub.f32 %v8198_v40, %v8205_v18 }
0x11b6   :  { %7230 = vmatpush3.bf16.msra.mxu1 %v7756_v17 }
0x11b7   :  { %v8211_v41 = vand.u32 4294901760, %v4010_v45  ;;  %7231 = vmatprep.subr.bf16.mxu1 %v7561_v21  ;;  %v4987_v45 = vand.u32 4294901760, %v8309_v37 }
0x11b9   :  { %6706 = vmatmul.mubr.f32.vlgmr.msra.gmra.mrb[32].mxu0 %v8211_v41  ;;  %6728 = vmatmul.mubr.f32.vlgmr.msra.gmra.mrb[32].mxu1 %v8198_v40 }
0x11ba   :  { %7233 = vmatpush3.bf16.msra.mxu1 %v7628_v14  ;;  %6738 = vmatprep.mubr.msk.f32.mxu1 %vm7562_vm1, %v7563_v15 }
0x11bb   :  { %7234 = vmatprep.subr.bf16.mxu1 %v7561_v21  ;;  %7251 = vmatpush3.bf16.msra.mxu0 %v7628_v14 }
0x11bc   :  { %7252 = vmatprep.subr.bf16.mxu0 %v7561_v21  ;;  %6771 = vmatprep.mubr.msk.f32.mxu0 %vm7562_vm1, %v7563_v15 }
0x11be   :  { %7236 = vmatpush3.bf16.msra.mxu1 %v7644_v20 }
0x11bf   :  { %7237 = vmatprep.subr.bf16.mxu1 %v7561_v21  ;;  %7254 = vmatpush3.bf16.msra.mxu0 %v7644_v20 }
0x11c0   :  { %7255 = vmatprep.subr.bf16.mxu0 %v7561_v21 }
0x11c1   :  { %6739 = vmatmul.mubr.f32.vlgmr.msra.gmra.mrb[32].mxu1 %v8205_v18 }
0x11c2   :  { %7239 = vmatpush3.bf16.msra.mxu1 %v7714_v61  ;;  %6749 = vmatprep.mubr.msk.f32.mxu1 %vm7562_vm1, %v7563_v15 }
0x11c3   :  { %7240 = vmatprep.subr.bf16.mxu1 %v7561_v21 }
0x11c6   :  { %7242 = vmatpush3.bf16.msra.mxu1 %v7731_v11 }
0x11c7   :  { %7243 = vmatprep.subr.bf16.mxu1 %v7561_v21 }
0x11c9   :  { %6750 = vmatmul.mubr.f32.vlgmr.msra.gmra.mrb[32].mxu1 %v8195_v39 }
0x11ca   :  { %7245 = vmatpush3.bf16.msra.mxu1 %v7628_v14  ;;  %6760 = vmatprep.mubr.msk.f32.mxu1 %vm7562_vm1, %v7563_v15 }
0x11cb   :  { %7246 = vmatprep.subr.bf16.mxu1 %v7561_v21 }
0x11ce   :  { %7248 = vmatpush3.bf16.msra.mxu1 %v7644_v20 }
0x11cf   :  { %7279 = vmatprep.subr.bf16.mxu1 %v7561_v21 }
0x11d1   :  { %6761 = vmatmul.mubr.f32.vlgmr.msra.gmra.mrb[32].mxu1 %v8195_v39 }
0x11d2   :  { %7281 = vmatpush3.bf16.msra.mxu1 %v7628_v14  ;;  %6826 = vmatprep.mubr.msk.f32.mxu1 %vm7562_vm1, %v7563_v15 }
0x11d3   :  { %7282 = vmatprep.subr.bf16.mxu1 %v7561_v21 }
0x11d6   :  { %7284 = vmatpush3.bf16.msra.mxu1 %v7644_v20 }
0x128c   :  { %v4013_v44 = vpop.f32.mrb[32].mxu0 }
0x128d   :  { %v4014_v46 = vadd.f32 %v7865_v62, %v4013_v44  ;;  %v6707_v49 = vpop.f32.mrb[33].mxu0 }
0x12a4   :  { %v4419_v35 = vpop.f32.mrb[32].mxu1 }
0x12a5   :  { %v7352_v58 = vadd.f32 %v4419_v35, %v4014_v46  ;;  %v6762_v59 = vpop.f32.mrb[33].mxu1 }
0x12a7   :  { %7521 = vtanh.f32 %v7352_v58  ;;  %v5794_v0 = vmul.f32 -1.442695, %v7352_v58 }
0x12a9   :  { %7523 = vpow2.f32 %v5794_v0 }
0x12b1   :  { %v7522_v63 = vpop.eup %7521 }
0x12b2   :  { %4432 = vrot.lane.b32.xlu0 %v7522_v63, %s7564_s2 }
0x12b3   :  { %v7524_v1 = vpop.eup %7523 }
0x12b4   :  { %v4426_v2 = vadd.f32 1.0, %v7524_v1 }
0x12b6   :  { %7525 = vrcp.f32 %v4426_v2 }
0x12c0   :  { %v7526_v3 = vpop.eup %7525 }
0x12c1   :  { %v4430_v62 = vmul.f32 %v7526_v3, %v8189_v28 }
0x1324   :  { %v4433_v4 = vpop.permute.xlu0 %4432 }
0x1325   :  { %v4435_v5 = vmul.f32 %v7526_v3, %v4433_v4 }
0x1327   :  { %4437 = vrot.lane.b32.xlu1 %v4435_v5, %s7565_s17 }
0x1399   :  { %v4438_v6 = vpop.permute.xlu1 %4437 }
0x139a   :  { %v8252_v51 = vadd.f32 %v4438_v6, %v4430_v62 }
0x139c   :  { %7527 = vtanh.f32 %v8252_v51 }
0x13a6   :  { %v7528_v7 = vpop.eup %7527 }
0x13a7   :  { %4443 = vrot.lane.b32.xlu0 %v7528_v7, %s7564_s2 }
0x1419   :  { %v4444_v8 = vpop.permute.xlu0 %4443 }
0x141a   :  { %v4446_v54 = vmul.f32 %v7526_v3, %v4444_v8 }
0x141c   :  { %4448 = vrot.lane.b32.xlu1 %v4446_v54, %s7565_s17 }
0x148e   :  { %v4449_v9 = vpop.permute.xlu1 %4448 }
0x148f   :  { %v4450_v22 = vsel %vm40_vm0, %v4449_v9, 0 }
0x1490   :  { %v8258_v26 = vand.u32 4294901760, %v4450_v22 }
0x1492   :  { %v8261_v31 = vsub.f32 %v4450_v22, %v8258_v26  ;;  %6827 = vmatmul.mubr.f32.vlgmr.msra.gmra.mrb[34].mxu1 %v8258_v26 }
0x1494   :  { %v8265_v28 = vand.u32 4294901760, %v8261_v31 }
0x1496   :  { %v4524_v32 = vsub.f32 %v8261_v31, %v8265_v28 }
0x1498   :  { %v4525_v34 = vand.u32 4294901760, %v4524_v32 }
0x149a   :  { %6772 = vmatmul.mubr.f32.vlgmr.msra.gmra.mrb[34].mxu0 %v4525_v34 }
0x149b   :  { %7257 = vmatpush3.bf16.msra.mxu0 %v7702_v53  ;;  %6782 = vmatprep.mubr.msk.f32.mxu0 %vm7562_vm1, %v7563_v15  ;;  %v8290_v53 = vld [vmem:[%s8414_s3] sm:$0xff] }
0x149c   :  { %7258 = vmatprep.subr.bf16.mxu0 %v7561_v21 }
0x149f   :  { %7260 = vmatpush3.bf16.msra.mxu0 %v7740_v23  ;;  %v8295_v23 = vld [vmem:[%s8414_s3 + $0x8] sm:$0xff] }
0x14a0   :  { %7261 = vmatprep.subr.bf16.mxu0 %v7561_v21 }
0x14a2   :  { %6783 = vmatmul.mubr.f32.vlgmr.msra.gmra.mrb[36].mxu0 %v8258_v26 }
0x14a3   :  { %7263 = vmatpush3.bf16.msra.mxu0 %v7746_v30  ;;  %6793 = vmatprep.mubr.msk.f32.mxu0 %vm7562_vm1, %v7563_v15  ;;  %v4981_v30 = vand.u32 4294901760, %v8295_v23 }
0x14a4   :  { %7264 = vmatprep.subr.bf16.mxu0 %v7561_v21 }
0x14a5   :  { %v5135_v22 = vsub.f32 %v8295_v23, %v4981_v30 }
0x14a7   :  { %7266 = vmatpush3.bf16.msra.mxu0 %v7756_v17  ;;  %v8304_v17 = vld [vmem:[%s8414_s3 + $0x10] sm:$0xff] }
0x14a8   :  { %7267 = vmatprep.subr.bf16.mxu0 %v7561_v21  ;;  %v4984_v38 = vand.u32 4294901760, %v8304_v17 }
0x14aa   :  { %6794 = vmatmul.mubr.f32.vlgmr.msra.gmra.mrb[38].mxu0 %v8261_v31 }
0x14ab   :  { %7269 = vmatpush3.bf16.msra.mxu0 %v7628_v14  ;;  %6804 = vmatprep.mubr.msk.f32.mxu0 %vm7562_vm1, %v7563_v15  ;;  %v4978_v14 = vand.u32 4294901760, %v8290_v53 }
0x14ac   :  { %7270 = vmatprep.subr.bf16.mxu0 %v7561_v21 }
0x14ad   :  { %v5128_v9 = vsub.f32 %v8290_v53, %v4978_v14  ;;  %v5149_v53 = vsub.f32 %v8309_v37, %v4987_v45 }
0x14af   :  { %7272 = vmatpush3.bf16.msra.mxu0 %v7644_v20  ;;  %v8316_v20 = vpack.c.bf16 %v4981_v30, %v4978_v14  ;;  %v5129_v32 = vand.u32 4294901760, %v5128_v9  ;;  %v5150_v14 = vand.u32 4294901760, %v5149_v53 }
0x14b0   :  { %7273 = vmatprep.subr.bf16.mxu0 %v7561_v21 }
0x14b2   :  { %6805 = vmatmul.mubr.f32.vlgmr.msra.gmra.mrb[40].mxu0 %v8265_v28 }
0x14b3   :  { %7275 = vmatpush3.bf16.msra.mxu0 %v7714_v61  ;;  %6815 = vmatprep.mubr.msk.f32.mxu0 %vm7562_vm1, %v7563_v15  ;;  %v8326_v61 = vpack.c.bf16 %v4987_v45, %v4984_v38 }
0x14b4   :  { %7276 = vmatprep.subr.bf16.mxu0 %v7561_v21 }
0x14b7   :  { %7278 = vmatpush3.bf16.msra.mxu0 %v7731_v11 }
0x14b8   :  { %7286 = vmatprep.subr.bf16.mxu0 %v8316_v20 }
0x14ba   :  { %6816 = vmatmul.mubr.f32.vlgmr.msra.gmra.mrb[42].mxu0 %v8258_v26 }
0x14bb   :  { %7288 = vmatpush3.bf16.msra.mxu0 %v8316_v20  ;;  %6837 = vmatprep.mubr.f32.mxu0 %v7885_v29 }
0x14bc   :  { %7290 = vmatprep.subr.bf16.mxu0 %v8326_v61 }
0x14bf   :  { %7292 = vmatpush3.bf16.msra.mxu0 %v8326_v61 }
0x14c2   :  { %6838 = vmatmul.mubr.f32.vlgmr.msra.gmra.mrb[44].mxu0 %v7955_v19 }
0x14c3   :  { %6840 = vmatprep.mubr.f32.mxu0 %v8019_v57 }
0x14c6   :  { %6841 = vmatmul.mubr.f32.gmra.mrb[46].mxu0 %v8083_v56 }
0x14c7   :  { %6843 = vmatprep.mubr.f32.mxu0 %v8147_v36 }
0x14ca   :  { %6844 = vmatmul.mubr.f32.gmra.mrb[48].mxu0 %v8211_v41 }
0x14cb   :  { %6846 = vmatprep.mubr.f32.mxu0 %v4525_v34  ;;  %v5136_v34 = vand.u32 4294901760, %v5135_v22 }
0x1565   :  { %v4933_v11 = vpop.f32.mrb[34].mxu1 }
0x1566   :  { %v6828_v21 = vpop.f32.mrb[35].mxu1 }
0x1567   :  { %v5137_v21 = vsub.f32 %v5135_v22, %v5136_v34 }
0x156d   :  { %v4527_v15 = vpop.f32.mrb[34].mxu0 }
0x156e   :  { %v4528_v29 = vadd.f32 %v7863_v60, %v4527_v15  ;;  %v6773_v44 = vpop.f32.mrb[35].mxu0 }
0x1575   :  { %v4618_v46 = vpop.f32.mrb[36].mxu0 }
0x1576   :  { %v4619_v49 = vadd.f32 %v4618_v46, %v4528_v29  ;;  %v6784_v35 = vpop.f32.mrb[37].mxu0  ;;  %v5138_v29 = vand.u32 4294901760, %v5137_v21 }
0x157d   :  { %v4698_v58 = vpop.f32.mrb[38].mxu0 }
0x157e   :  { %v4699_v19 = vadd.f32 %v4698_v58, %v4619_v49  ;;  %v6795_v59 = vpop.f32.mrb[39].mxu0  ;;  %v5151_v49 = vsub.f32 %v5149_v53, %v5150_v14 }
0x1580   :  { %v5152_v58 = vand.u32 4294901760, %v5151_v49 }
0x1585   :  { %v4775_v57 = vpop.f32.mrb[40].mxu0 }
0x1586   :  { %v4776_v63 = vadd.f32 %v4775_v57, %v4699_v19  ;;  %v6806_v56 = vpop.f32.mrb[41].mxu0 }
0x158d   :  { %v4858_v0 = vpop.f32.mrb[42].mxu0 }
0x158e   :  { %v4859_v36 = vadd.f32 %v4858_v0, %v4776_v63  ;;  %v6817_v1 = vpop.f32.mrb[43].mxu0  ;;  %v7301_v63 = vpack.c.bf16 %v5135_v22, %v5128_v9 }
0x1590   :  { %v4934_v41 = vadd.f32 %v4933_v11, %v4859_v36  ;;  %v5130_v11 = vsub.f32 %v5128_v9, %v5129_v32 }
0x1592   :  { %7529 = vtanh.f32 %v4934_v41  ;;  %v5795_v3 = vmul.f32 -1.442695, %v4934_v41  ;;  %v5131_v15 = vand.u32 4294901760, %v5130_v11 }
0x1594   :  { %7531 = vpow2.f32 %v5795_v3  ;;  %v7293_v44 = vpack.c.bf16 %v5138_v29, %v5131_v15 }
0x1596   :  { %7294 = vmatprep.subr.bf16.mxu0 %v7293_v44 }
0x1597   :  { %7296 = vmatpush3.bf16.msra.mxu0 %v7293_v44 }
0x159c   :  { %v7530_v2 = vpop.eup %7529 }
0x159d   :  { %4946 = vrot.lane.b32.xlu0 %v7530_v2, %s7564_s2  ;;  %v7317_v2 = vpack.c.bf16 %v5136_v34, %v5129_v32 }
0x159e   :  { %v7532_v60 = vpop.eup %7531 }
0x159f   :  { %v4940_v4 = vadd.f32 1.0, %v7532_v60 }
0x15a1   :  { %7533 = vrcp.f32 %v4940_v4 }
0x15ab   :  { %v7534_v5 = vpop.eup %7533 }
0x15ac   :  { %v4944_v7 = vmul.f32 %v7534_v5, %v8252_v51  ;;  %v5142_v51 = vsub.f32 %v8304_v17, %v4984_v38 }
0x15ae   :  { %v5143_v23 = vand.u32 4294901760, %v5142_v51  ;;  %v7305_v17 = vpack.c.bf16 %v5149_v53, %v5142_v51 }
0x15b0   :  { %v5144_v30 = vsub.f32 %v5142_v51, %v5143_v23  ;;  %v7321_v38 = vpack.c.bf16 %v5150_v14, %v5143_v23 }
0x15b2   :  { %v5145_v35 = vand.u32 4294901760, %v5144_v30 }
0x15b4   :  { %v7297_v19 = vpack.c.bf16 %v5152_v58, %v5145_v35 }
0x15b6   :  { %7298 = vmatprep.subr.bf16.mxu0 %v7297_v19 }
0x15b7   :  { %7300 = vmatpush3.bf16.msra.mxu0 %v7297_v19 }
0x15b8   :  { %7302 = vmatprep.subr.bf16.mxu0 %v7301_v63 }
0x160f   :  { %v4947_v62 = vpop.permute.xlu0 %4946 }
0x1610   :  { %v4949_v6 = vmul.f32 %v7534_v5, %v4947_v62 }
0x1612   :  { %4951 = vrot.lane.b32.xlu1 %v4949_v6, %s7565_s17 }
0x1684   :  { %v4952_v8 = vpop.permute.xlu1 %4951 }
0x1685   :  { %v4954_v54 = vadd.f32 %v4952_v8, %v4944_v7 }
0x1687   :  { %7535 = vtanh.f32 %v4954_v54 }
0x1691   :  { %v7536_v46 = vpop.eup %7535 }
0x1692   :  { %4957 = vrot.lane.b32.xlu0 %v7536_v46, %s7564_s2 }
0x1704   :  { %v4958_v59 = vpop.permute.xlu0 %4957 }
0x1705   :  { %v4960_v57 = vmul.f32 %v7534_v5, %v4958_v59 }
0x1707   :  { %4973 = vrot.lane.b32.xlu1 %v4960_v57, %s7565_s17 }
0x1779   :  { %v4974_v56 = vpop.permute.xlu1 %4973 }
0x177a   :  { %v4975_v37 = vsel %vm40_vm0, %v4974_v56, 0 }
0x177b   :  { %v5116_v45 = vand.u32 4294901760, %v4975_v37 }
0x177d   :  { %v5117_v0 = vsub.f32 %v4975_v37, %v5116_v45 }
0x177f   :  { %v5118_v36 = vand.u32 4294901760, %v5117_v0 }
0x1781   :  { %v5119_v1 = vsub.f32 %v5117_v0, %v5118_v36 }
0x1783   :  { %v5120_v41 = vand.u32 4294901760, %v5119_v1 }
0x1785   :  { %6847 = vmatmul.mubr.f32.gmra.mrb[50].mxu0 %v5120_v41 }
0x1786   :  { %6857 = vmatprep.mubr.f32.mxu0 %v7875_v16 }
0x1789   :  { %6858 = vmatmul.mubr.f32.vlgmr.msra.gmra.mrb[44].mxu0 %v7939_v10 }
0x178a   :  { %6860 = vmatprep.mubr.f32.mxu0 %v8003_v50  ;;  %7304 = vmatpush3.bf16.msra.mxu0 %v7301_v63 }
0x178b   :  { %7306 = vmatprep.subr.bf16.mxu0 %v7305_v17 }
0x178d   :  { %6861 = vmatmul.mubr.f32.gmra.mrb[46].mxu0 %v8067_v47 }
0x178e   :  { %6863 = vmatprep.mubr.f32.mxu0 %v8131_v43  ;;  %7308 = vmatpush3.bf16.msra.mxu0 %v7305_v17 }
0x178f   :  { %7310 = vmatprep.subr.bf16.mxu0 %v8316_v20 }
0x1791   :  { %6864 = vmatmul.mubr.f32.gmra.mrb[48].mxu0 %v8195_v39 }
0x1792   :  { %6866 = vmatprep.mubr.f32.mxu0 %v8258_v26 }
0x1795   :  { %6867 = vmatmul.mubr.f32.gmra.mrb[50].mxu0 %v5116_v45 }
0x1796   :  { %6877 = vmatprep.mubr.f32.mxu0 %v7878_v24  ;;  %v5796_v24 = vld [vmem:[%s8415_s4] ss:$0 sm:$0xff]  ;;  %s7537_s4 = scalar_lea.vmem %s5777_s28, 1024 }
0x1797   :  { %p7538_p0 = scmp.ne.s32.totalorder %s5777_s28, %s7537_s4  ;;  %p7543_p2 = scmp.lt.s32.totalorder %s7537_s4, %s7537_s4 }
0x1799   :  { %6878 = vmatmul.mubr.f32.vlgmr.msra.gmra.mrb[44].mxu0 %v7942_v12  ;;  %p7544_p3 = por %p7543_p2, %p7542_p1 }
0x179a   :  { %6880 = vmatprep.mubr.f32.mxu0 %v8006_v52  ;;  %7312 = vmatpush3.bf16.msra.mxu0 %v8316_v20 }
0x179b   :  { %7314 = vmatprep.subr.bf16.mxu0 %v8326_v61  ;;  %p7545_p4 = pnand %p7544_p3, %p7538_p0 }
0x179d   :  { %6881 = vmatmul.mubr.f32.gmra.mrb[46].mxu0 %v8070_v48 }
0x179e   :  { %6883 = vmatprep.mubr.f32.mxu0 %v8134_v27  ;;  %7316 = vmatpush3.bf16.msra.mxu0 %v8326_v61 }
0x179f   :  { %7318 = vmatprep.subr.bf16.mxu0 %v7317_v2 }
0x17a1   :  { %6884 = vmatmul.mubr.f32.gmra.mrb[48].mxu0 %v8198_v40 }
0x17a2   :  { %6886 = vmatprep.mubr.f32.mxu0 %v8261_v31 }
0x17a5   :  { %6887 = vmatmul.mubr.f32.gmra.mrb[50].mxu0 %v5117_v0 }
0x17a6   :  { %6897 = vmatprep.mubr.f32.mxu0 %v7881_v25 }
0x17a9   :  { %6898 = vmatmul.mubr.f32.vlgmr.msra.gmra.mrb[44].mxu0 %v7949_v13 }
0x17aa   :  { %6900 = vmatprep.mubr.f32.mxu0 %v8013_v55  ;;  %7320 = vmatpush3.bf16.msra.mxu0 %v7317_v2 }
0x17ab   :  { %7322 = vmatprep.subr.bf16.mxu0 %v7321_v38 }
0x17ad   :  { %6901 = vmatmul.mubr.f32.gmra.mrb[46].mxu0 %v8077_v42 }
0x17ae   :  { %6903 = vmatprep.mubr.f32.mxu0 %v8141_v33  ;;  %7324 = vmatpush3.bf16.msra.mxu0 %v7321_v38 }
0x17af   :  { %7326 = vmatprep.subr.bf16.mxu0 %v8316_v20 }
0x17b1   :  { %6904 = vmatmul.mubr.f32.gmra.mrb[48].mxu0 %v8205_v18 }
0x17b2   :  { %6906 = vmatprep.mubr.f32.mxu0 %v8265_v28 }
0x17b5   :  { %6907 = vmatmul.mubr.f32.gmra.mrb[50].mxu0 %v5118_v36 }
0x17b6   :  { %6917 = vmatprep.mubr.f32.mxu0 %v7875_v16 }
0x17b9   :  { %6918 = vmatmul.mubr.f32.vlgmr.msra.gmra.mrb[44].mxu0 %v7939_v10 }
0x17ba   :  { %6920 = vmatprep.mubr.f32.mxu0 %v8003_v50  ;;  %7328 = vmatpush3.bf16.msra.mxu0 %v8316_v20 }
0x17bb   :  { %7330 = vmatprep.subr.bf16.mxu0 %v8326_v61 }
0x17bd   :  { %6921 = vmatmul.mubr.f32.gmra.mrb[46].mxu0 %v8067_v47 }
0x17be   :  { %6923 = vmatprep.mubr.f32.mxu0 %v8131_v43  ;;  %7332 = vmatpush3.bf16.msra.mxu0 %v8326_v61 }
0x17c1   :  { %6924 = vmatmul.mubr.f32.gmra.mrb[48].mxu0 %v8195_v39 }
0x17c2   :  { %6926 = vmatprep.mubr.f32.mxu0 %v8258_v26 }
0x17c5   :  { %6927 = vmatmul.mubr.f32.gmra.mrb[50].mxu0 %v5116_v45 }
0x17c6   :  { %6937 = vmatprep.mubr.f32.mxu0 %v7875_v16 }
0x17c9   :  { %6938 = vmatmul.mubr.f32.vlgmr.msra.gmra.mrb[44].mxu0 %v7939_v10 }
0x17ca   :  { %6940 = vmatprep.mubr.f32.mxu0 %v8003_v50 }
0x17cd   :  { %6941 = vmatmul.mubr.f32.gmra.mrb[46].mxu0 %v8067_v47 }
0x17ce   :  { %6943 = vmatprep.mubr.f32.mxu0 %v8131_v43 }
0x17d1   :  { %6944 = vmatmul.mubr.f32.gmra.mrb[48].mxu0 %v8195_v39 }
0x17d2   :  { %6946 = vmatprep.mubr.f32.mxu0 %v8258_v26 }
0x17d5   :  { %6947 = vmatmul.mubr.f32.gmra.mrb[50].mxu0 %v5116_v45 }
0x189c   :  { %v6939_v25 = vpop.f32.mrb[44].mxu0 }
0x189d   :  { %v7353_v12 = vadd.f32 %v6939_v25, %v5796_v24  ;;  %v5717_v16 = vpop.f32.mrb[45].mxu0 }
0x189e   :  { %v7354_v13 = vadd.f32 %v5796_v24, %v5717_v16 }
0x189f   :  { %5764 = vst [vmem:[#allocation2 + $0x8] sm:$0xff] %v7353_v12 }
0x18a0   :  { %5763 = vst [vmem:[#allocation2] sm:$0xff] %v7354_v13  ;;  %v6942_v10 = vpop.f32.mrb[46].mxu0 }
0x18a1   :  { %v7355_v50 = vadd.f32 %v6942_v10, %v5796_v24  ;;  %v5729_v52 = vpop.f32.mrb[47].mxu0 }
0x18a2   :  { %v7356_v55 = vadd.f32 %v5796_v24, %v5729_v52 }
0x18a3   :  { %5766 = vst [vmem:[#allocation2 + $0x18] sm:$0xff] %v7355_v50 }
0x18a4   :  { %5765 = vst [vmem:[#allocation2 + $0x10] sm:$0xff] %v7356_v55  ;;  %v6945_v47 = vpop.f32.mrb[48].mxu0 }
0x18a5   :  { %v7357_v48 = vadd.f32 %v6945_v47, %v5796_v24  ;;  %v5741_v42 = vpop.f32.mrb[49].mxu0 }
0x18a6   :  { %v7358_v43 = vadd.f32 %v5796_v24, %v5741_v42 }
0x18a7   :  { %5768 = vst [vmem:[#allocation2 + $0x28] sm:$0xff] %v7357_v48 }
0x18a8   :  { %5767 = vst [vmem:[#allocation2 + $0x20] sm:$0xff] %v7358_v43  ;;  %v6948_v27 = vpop.f32.mrb[50].mxu0 }
0x18a9   :  { %v7359_v33 = vadd.f32 %v6948_v27, %v5796_v24  ;;  %v5753_v39 = vpop.f32.mrb[51].mxu0 }
0x18aa   :  { %v7360_v40 = vadd.f32 %v5796_v24, %v5753_v39 }
0x18ab   :  { %5770 = vst [vmem:[#allocation2 + $0x38] sm:$0xff] %v7359_v33 }
0x18ac   :  { %5769 = vst [vmem:[#allocation2 + $0x30] sm:$0xff] %v7360_v40 }
0x18ad   :  { %7548 = shalt.err (!%p7545_p4)
}
0x18ae   :  { %s7549_s6 = scalar_lea.hbm %s8416_s5, 1024 }
0x18af   :  { %p7550_p5 = scmp.ne.s32.totalorder %s8416_s5, %s7549_s6  ;;  %p7553_p6 = scmp.lt.u32.totalorder %s7549_s6, %s8416_s5 }
0x18b1   :  { %p7555_p7 = pnand %p7553_p6, %p7550_p5 }
0x18b3   :  { %7558 = shalt.err (!%p7555_p7)
}
0x18b4   :  { %s7567_s10 = smov 128   ;;  %s7568_s11 = smov 8  }
0x18b5   :  { %5782 = dma.vmem_to_hbm [thread:$0]  %s5777_s28, 1024, %s8416_s5, [#allocation3], %s7567_s10, %s7567_s10, %s7568_s11  }
0x18b6   :  { %7559 = dma.done.wait [#allocation3], 1024  }
0x18b7   :  { %7560 = vsyncadd [#allocation3], 4294966272 }
0x18b8   :  { %5786 = vsyncpa [#allocation3], 1 }

</bundles_post_ra>
